<compile_context>
chip_gen: v6e
topology: v6e:2x2x1
jax: 0.10.0
libtpu: 0.0.40
codegen_flags: <defaults>
</compile_context>

<pallas_src>
import functools

import jax
import jax.numpy as jnp
from jax import lax
from jax.experimental import pallas as pl
from jax.experimental.pallas import tpu as pltpu

_LANE = 128
_SUBLANE = 8


def _round_up(n, m):
    return (n + m - 1) // m * m


# ----------------------------------------------------------------------------- kernel


def _lstm_kernel(x_ref, wih_ref, whh_ref, bias_ref, fcw_ref, fcb_ref, out_ref,
                 xg_ref, *, seq_len):
    """Fused bidirectional LSTM + final linear for one batch tile.

    x_ref   : (T*Bt, Ep)  bf16  time-major flattened input (row = t*Bt + b)
    wih_ref : (Ep, 8Hp)   bf16  input->gate weights, both dirs, gate-major cols
    whh_ref : (2Hp, 8Hp)  bf16  block-diagonal hidden->gate weights
    bias_ref: (1, 8Hp)    f32   combined bias (b_ih + b_hh), same column order
    fcw_ref : (1, 2Hp)    f32   final linear weight (row vector)
    fcb_ref : (1, 1)      f32   final linear bias
    out_ref : (Bt, 1)     f32
    xg_ref  : (T*Bt, 8Hp) f32   VMEM scratch: hoisted gate-input slab (time-major)

    Gate-column order (8Hp axis): gate-major (i, f, o, g), direction-minor
    (fwd Hp lanes then bwd Hp lanes inside each 2Hp gate block). Sigmoid gates
    (i, f, o) therefore occupy the contiguous lanes [0, 3*2Hp).
    """
    T = seq_len
    TB = x_ref.shape[0]
    Bt = TB // T
    H2, H8 = whh_ref.shape            # 2Hp, 8Hp (both multiples of 128)
    Hp = H2 // 2

    # ---- 1) hoisted input projection: one MXU matmul for all timesteps & dirs ----
    xg = jnp.dot(x_ref[...], wih_ref[...], preferred_element_type=jnp.float32)
    xg_ref[...] = xg + bias_ref[...]          # bias folded once, f32, into scratch

    # ---- 2) hoisted fwd/bwd merge (outside the recurrence) --------------------
    # After this pass, time-row-block s of xg_ref holds the forward-direction gate
    # inputs of time s on the fwd lanes and the backward-direction gate inputs of
    # time T-1-s on the bwd lanes; the recurrence loads exactly one slice per step.
    is_fwd = (lax.broadcasted_iota(jnp.int32, (Bt, H8), 1) % H2) < Hp
    for s in range(T // 2):                   # independent iterations, tiny live set
        lo = s * Bt
        hi = (T - 1 - s) * Bt
        a = xg_ref[lo:lo + Bt, :]
        b = xg_ref[hi:hi + Bt, :]
        xg_ref[lo:lo + Bt, :] = jnp.where(is_fwd, a, b)
        xg_ref[hi:hi + Bt, :] = jnp.where(is_fwd, b, a)

    w_hh = whh_ref[...]                       # (2Hp, 8Hp) block-diagonal, bf16

    # ---- 3) fused fwd+bwd recurrence ------------------------------------------
    def step(s, carry):
        h, c = carry
        start = s * Bt
        if Bt % _SUBLANE == 0:
            start = pl.multiple_of(start, _SUBLANE)
        gx = xg_ref[pl.ds(start, Bt), :]      # contiguous (Bt, 8Hp) load
        gates = gx + jnp.dot(h.astype(jnp.bfloat16), w_hh,
                             preferred_element_type=jnp.float32)
        # Split activations: sigmoid on the contiguous i|f|o region, tanh on g only.
        sig = jax.nn.sigmoid(gates[:, :3 * H2])
        i_g = sig[:, 0 * H2:1 * H2]
        f_g = sig[:, 1 * H2:2 * H2]
        o_g = sig[:, 2 * H2:3 * H2]
        g_g = jnp.tanh(gates[:, 3 * H2:4 * H2])
        c = f_g * c + i_g * g_g
        h = o_g * jnp.tanh(c)
        return h, c

    h0 = jnp.zeros((Bt, H2), jnp.float32)     # lanes [0:Hp]=fwd, [Hp:2Hp]=bwd
    c0 = jnp.zeros((Bt, H2), jnp.float32)
    unroll = 8 if T % 8 == 0 else (4 if T % 4 == 0 else (2 if T % 2 == 0 else 1))
    h, _ = lax.fori_loop(0, T, step, (h0, c0), unroll=unroll)

    # ---- 4) final linear (dropout is inference-identity) ----------------------
    out_ref[...] = (jnp.sum(h * fcw_ref[...], axis=-1, keepdims=True)
                    + fcb_ref[...])


# ----------------------------------------------------------------------------- tiling policy


def _tile_working_set_bytes(b_tile, T, Ep, H8p, H2p):
    x_tile = T * b_tile * Ep * 2 * 2                     # bf16, double-buffered
    wih = Ep * H8p * 2 * 2
    whh = H2p * H8p * 2 * 2
    small = (H8p + H2p + 2) * 4 * 2                      # bias / fc weights
    xg = _round_up(T * b_tile, _SUBLANE) * H8p * 4       # f32 gate slab scratch
    out = _round_up(b_tile, _SUBLANE) * _LANE * 4 * 2
    return x_tile + wih + whh + small + xg + out


def _num_tensorcores_per_chip():
    try:
        kind = jax.devices()[0].device_kind.lower()
        return 2 if "v7" in kind else 1
    except Exception:
        return 1


def _pick_grid(batch, T, Ep, H8p, H2p):
    # v5e/v6e: 1 TensorCore -> the grid is a serial loop, so never split the batch
    # unless the VMEM working set forces it. v7x: 2 TensorCores -> exactly 2
    # parallel batch tiles when the batch is big enough to be worth it.
    g = 1
    if _num_tensorcores_per_chip() == 2 and batch % 2 == 0 and batch >= 16:
        g = 2
    budget = 40 * 1024 * 1024       # per-tile cap; leaves headroom on v7x's 64 MiB
    while (_tile_working_set_bytes(batch // g, T, Ep, H8p, H2p) > budget
           and batch % (2 * g) == 0):
        g *= 2
    return g, batch // g


def _vmem_limit_bytes(b_tile, T, Ep, H8p, H2p):
    est = _tile_working_set_bytes(b_tile, T, Ep, H8p, H2p)
    # 2x headroom for live vregs / compiler temporaries; ceiling stays safe on
    # v7x's 64 MiB physical VMEM while allowing large tiles on v5e/v6e (128 MiB).
    return int(min(max(2 * est, 16 * 1024 * 1024), 56 * 1024 * 1024))


# ----------------------------------------------------------------------------- wrapper


@jax.jit
def lstm_forward(vec, wih, whh, bias, fcw, fcb):
    """vec: (B, T, E) float input (batch_first, like PyTorch)."""
    B, T, E = vec.shape
    Ep, H8p = wih.shape
    H2p = whh.shape[0]

    G, b_tile = _pick_grid(B, T, Ep, H8p, H2p)

    # One-time layout plumbing (no per-step transposes in the kernel):
    # bf16 cast, zero-pad E to a lane multiple, go time-major, pre-group batch
    # tiles so every BlockSpec block equals a full array dimension.
    x = vec.astype(jnp.bfloat16)
    if E < Ep:
        x = jnp.pad(x, ((0, 0), (0, 0), (0, Ep - E)))
    x = jnp.transpose(x, (1, 0, 2))                          # (T, B, Ep)
    if G > 1:
        x = x.reshape(T, G, b_tile, Ep).transpose(1, 0, 2, 3)
        x = x.reshape(G, T * b_tile, Ep)
    else:
        x = x.reshape(1, T * B, Ep)

    kernel = functools.partial(_lstm_kernel, seq_len=T)

    out = pl.pallas_call(
        kernel,
        out_shape=jax.ShapeDtypeStruct((G, b_tile, 1), jnp.float32),
        grid=(G,),
        in_specs=[
            pl.BlockSpec((None, T * b_tile, Ep), lambda i: (i, 0, 0)),
            pl.BlockSpec((Ep, H8p), lambda i: (0, 0)),
            pl.BlockSpec((H2p, H8p), lambda i: (0, 0)),
            pl.BlockSpec((1, H8p), lambda i: (0, 0)),
            pl.BlockSpec((1, H2p), lambda i: (0, 0)),
            pl.BlockSpec((1, 1), lambda i: (0, 0)),
        ],
        out_specs=pl.BlockSpec((None, b_tile, 1), lambda i: (i, 0, 0)),
        scratch_shapes=[pltpu.VMEM((T * b_tile, H8p), jnp.float32)],
        compiler_params=pltpu.CompilerParams(
            dimension_semantics=("parallel",),
            vmem_limit_bytes=_vmem_limit_bytes(b_tile, T, Ep, H8p, H2p),
        ),
    )(x, wih, whh, bias, fcw, fcb)
    return out.reshape(B, 1)


# ----------------------------------------------------------------------------- params


def init_params(key, embedding_dim, hidden_dim):
    """Raw PyTorch-shaped parameters (n_layers=1, bidirectional)."""
    H, E = hidden_dim, embedding_dim
    k = 1.0 / jnp.sqrt(jnp.float32(H))
    keys = jax.random.split(key, 6)
    u = lambda kk, shape: jax.random.uniform(kk, shape, jnp.float32, -k, k)

    w_ih = u(keys[0], (2, 4 * H, E))    # dir 0 = forward, dir 1 = reverse; rows = [i f g o]
    w_hh = u(keys[1], (2, 4 * H, H))
    b_ih = u(keys[2], (2, 4 * H))
    b_hh = u(keys[3], (2, 4 * H))
    fc_w = u(keys[4], (1, 2 * H))
    fc_b = u(keys[5], (1,))
    return w_ih, w_hh, b_ih, b_hh, fc_w, fc_b


def pack_params(w_ih, w_hh, b_ih, b_hh, fc_w, fc_b):
    """Repack + pad PyTorch-layout weights for the kernel (pure glue, no math change).

    Gate-axis column index = slot*2Hp + dir*Hp + j with slot order (i, f, o, g),
    Hp = H rounded up so 2Hp is a multiple of 128 and Ep = E rounded up to 128.
    Padded columns/rows/bias are zero, which keeps the padded state lanes exactly
    zero through the recurrence (sigmoid(0)=0.5 gates on a zero cell, tanh(0)=0).
    """
    n_dir, fourH, E = w_ih.shape
    assert n_dir == 2, "kernel assumes a bidirectional single-layer LSTM"
    H = fourH // 4
    Hp = _round_up(H, _LANE // 2)       # 2*Hp is a multiple of 128
    Ep = _round_up(E, _LANE)
    H2p = 2 * Hp

    # PyTorch row-block order is (i, f, g, o); kernel column order is (i, f, o, g)
    # so the sigmoid gates occupy the contiguous lanes [0, 3*2Hp).
    torch_gate_of_slot = (0, 1, 3, 2)

    wih_c = jnp.zeros((Ep, 8 * Hp), jnp.float32)
    whh_c = jnp.zeros((H2p, 8 * Hp), jnp.float32)
    bias_c = jnp.zeros((1, 8 * Hp), jnp.float32)
    for slot, g in enumerate(torch_gate_of_slot):
        rows = slice(g * H, (g + 1) * H)
        for d in range(2):
            c0 = slot * H2p + d * Hp
            wih_c = wih_c.at[:E, c0:c0 + H].set(w_ih[d, rows, :].T)
            whh_c = whh_c.at[d * Hp:d * Hp + H, c0:c0 + H].set(w_hh[d, rows, :].T)
            bias_c = bias_c.at[0, c0:c0 + H].set(b_ih[d, rows] + b_hh[d, rows])

    fcw_c = jnp.zeros((1, H2p), jnp.float32)
    fcw_c = fcw_c.at[0, 0:H].set(fc_w[0, :H])          # forward half of hidden_concat
    fcw_c = fcw_c.at[0, Hp:Hp + H].set(fc_w[0, H:])    # backward half
    fcb_c = fc_b.reshape(1, 1)

    return (wih_c.astype(jnp.bfloat16), whh_c.astype(jnp.bfloat16),
            bias_c, fcw_c, fcb_c)


# ----------------------------------------------------------------------------- reference


def lstm_reference(vec, w_ih, w_hh, b_ih, b_hh, fc_w, fc_b):
    """Pure-JAX f32 reference matching the PyTorch forward."""
    x = vec.astype(jnp.float32)
    B, T, _E = x.shape
    H = w_hh.shape[2]
    finals = []
    for d, rev in ((0, False), (1, True)):
        h = jnp.zeros((B, H), jnp.float32)
        c = jnp.zeros((B, H), jnp.float32)
        order = range(T - 1, -1, -1) if rev else range(T)
        for t in order:
            g = (x[:, t, :] @ w_ih[d].T + b_ih[d] + h @ w_hh[d].T + b_hh[d])
            i_g = jax.nn.sigmoid(g[:, 0 * H:1 * H])
            f_g = jax.nn.sigmoid(g[:, 1 * H:2 * H])
            g_g = jnp.tanh(g[:, 2 * H:3 * H])
            o_g = jax.nn.sigmoid(g[:, 3 * H:4 * H])
            c = f_g * c + i_g * g_g
            h = o_g * jnp.tanh(c)
        finals.append(h)
    hidden = jnp.concatenate(finals, axis=1)
    return hidden @ fc_w.T + fc_b


if __name__ == "__main__":
    # Small shapes: batch=2, seq=8, embedding_dim=16, hidden_dim=32, n_layers=1.
    B, T, E, H = 2, 8, 16, 32

    key = jax.random.PRNGKey(0)
    k_x, k_p = jax.random.split(key)
    vec = jax.random.normal(k_x, (B, T, E), jnp.float32)

    raw = init_params(k_p, E, H)
    packed = pack_params(*raw)

    out = lstm_forward(vec, *packed)
    jax.block_until_ready(out)

    assert out.shape == (B, 1) and out.dtype == jnp.float32
    ref = lstm_reference(vec, *raw)
    assert jnp.allclose(out, ref, atol=3e-2, rtol=3e-2), (out, ref)
    print("KERNEL_OK")
</pallas_src>

<mosaic_0001>
module attributes {stable_mosaic.version = 11 : i64} {
  func.func @_lstm_kernel(%arg0: i32, %arg1: memref<1x16x128xbf16, #tpu.memory_space<vmem>>, %arg2: memref<128x512xbf16, #tpu.memory_space<vmem>>, %arg3: memref<128x512xbf16, #tpu.memory_space<vmem>>, %arg4: memref<1x512xf32, #tpu.memory_space<vmem>>, %arg5: memref<1x128xf32, #tpu.memory_space<vmem>>, %arg6: memref<1x1xf32, #tpu.memory_space<vmem>>, %arg7: memref<1x2x1xf32, #tpu.memory_space<vmem>>, %arg8: memref<16x512xf32, #tpu.memory_space<vmem>>) attributes {dimension_semantics = [#tpu.dimension_semantics<parallel>], iteration_bounds = array<i64: 1>, scalar_prefetch = 0 : i64, scratch_operands = 1 : i64, tpu.core_type = #tpu.core_type<tc>, window_params = [{transform_indices = @transform_0, window_bounds = array<i64: 1, 16, 128>}, {pipeline_mode = #tpu.pipeline_mode<synchronous>, transform_indices = @transform_1, window_bounds = array<i64: 128, 512>}, {pipeline_mode = #tpu.pipeline_mode<synchronous>, transform_indices = @transform_2, window_bounds = array<i64: 128, 512>}, {pipeline_mode = #tpu.pipeline_mode<synchronous>, transform_indices = @transform_3, window_bounds = array<i64: 1, 512>}, {pipeline_mode = #tpu.pipeline_mode<synchronous>, transform_indices = @transform_4, window_bounds = array<i64: 1, 128>}, {pipeline_mode = #tpu.pipeline_mode<synchronous>, transform_indices = @transform_5, window_bounds = array<i64: 1, 1>}, {transform_indices = @transform_6, window_bounds = array<i64: 1, 2, 1>}]} {
    %c0 = arith.constant 0 : index
    %c0_0 = arith.constant 0 : index
    %c0_1 = arith.constant 0 : index
    %0 = vector.load %arg1[%c0, %c0_0, %c0_1] : memref<1x16x128xbf16, #tpu.memory_space<vmem>>, vector<1x16x128xbf16>
    %1 = vector.shape_cast %0 : vector<1x16x128xbf16> to vector<16x128xbf16>
    %c0_2 = arith.constant 0 : index
    %c0_3 = arith.constant 0 : index
    %2 = vector.load %arg2[%c0_2, %c0_3] : memref<128x512xbf16, #tpu.memory_space<vmem>>, vector<128x512xbf16>
    %cst = arith.constant dense<0.000000e+00> : vector<16x512xf32>
    %3 = tpu.matmul %1, %2, %cst {dimension_numbers = #tpu.dot_dimension_numbers<[1], [0], [0], [1], [0, 0, 1, 1], [], []>} : vector<16x128xbf16>, vector<128x512xbf16>, vector<16x512xf32> -> vector<16x512xf32>
    %c0_4 = arith.constant 0 : index
    %c0_5 = arith.constant 0 : index
    %4 = vector.load %arg4[%c0_4, %c0_5] : memref<1x512xf32, #tpu.memory_space<vmem>>, vector<1x512xf32>
    %5 = vector.broadcast %4 : vector<1x512xf32> to vector<16x512xf32>
    %6 = arith.addf %3, %5 : vector<16x512xf32>
    %c0_6 = arith.constant 0 : index
    %c0_7 = arith.constant 0 : index
    %7 = vector.load %arg8[%c0_6, %c0_7] : memref<16x512xf32, #tpu.memory_space<vmem>>, vector<16x512xf32>
    tpu.vector_store %arg8[%c0_6, %c0_7], %6 {strides = array<i32>} : memref<16x512xf32, #tpu.memory_space<vmem>>, vector<16x512xf32>,
    %8 = tpu.iota {dimensions = array<i32: 1>} : vector<2x512xi32>
    %c128_i32 = arith.constant 128 : i32
    %c0_i32 = arith.constant 0 : i32
    %9 = arith.cmpi eq, %c128_i32, %c0_i32 : i32
    %c1_i32 = arith.constant 1 : i32
    %10 = arith.select %9, %c1_i32, %c128_i32 : i32
    %11 = vector.broadcast %10 : i32 to vector<2x512xi32>
    %12 = arith.remsi %8, %11 : vector<2x512xi32>
    %c0_i32_8 = arith.constant 0 : i32
    %13 = vector.broadcast %c0_i32_8 : i32 to vector<2x512xi32>
    %14 = arith.cmpi ne, %12, %13 : vector<2x512xi32>
    %c0_i32_9 = arith.constant 0 : i32
    %15 = vector.broadcast %c0_i32_9 : i32 to vector<2x512xi32>
    %16 = arith.cmpi slt, %12, %15 : vector<2x512xi32>
    %c0_i32_10 = arith.constant 0 : i32
    %17 = arith.cmpi slt, %10, %c0_i32_10 : i32
    %18 = vector.broadcast %17 : i1 to vector<2x512xi1>
    %19 = vector.broadcast %18 : vector<2x512xi1> to vector<2x512xi1>
    %20 = arith.xori %16, %19 : vector<2x512xi1>
    %21 = arith.andi %20, %14 : vector<2x512xi1>
    %22 = vector.broadcast %10 : i32 to vector<2x512xi32>
    %23 = arith.addi %12, %22 : vector<2x512xi32>
    %24 = arith.select %21, %23, %12 : vector<2x512xi1>, vector<2x512xi32>
    %c64_i32 = arith.constant 64 : i32
    %25 = vector.broadcast %c64_i32 : i32 to vector<2x512xi32>
    %26 = arith.cmpi slt, %24, %25 : vector<2x512xi32>
    %c0_11 = arith.constant 0 : index
    %c0_12 = arith.constant 0 : index
    %27 = vector.load %arg8[%c0_11, %c0_12] : memref<16x512xf32, #tpu.memory_space<vmem>>, vector<2x512xf32>
    %c14 = arith.constant 14 : index
    %c0_13 = arith.constant 0 : index
    %28 = vector.load %arg8[%c14, %c0_13] : memref<16x512xf32, #tpu.memory_space<vmem>>, vector<2x512xf32>
    %29 = arith.select %26, %27, %28 : vector<2x512xi1>, vector<2x512xf32>
    %c0_14 = arith.constant 0 : index
    %c0_15 = arith.constant 0 : index
    %30 = vector.load %arg8[%c0_14, %c0_15] : memref<16x512xf32, #tpu.memory_space<vmem>>, vector<2x512xf32>
    tpu.vector_store %arg8[%c0_14, %c0_15], %29 {strides = array<i32>} : memref<16x512xf32, #tpu.memory_space<vmem>>, vector<2x512xf32>,
    %31 = arith.select %26, %28, %27 : vector<2x512xi1>, vector<2x512xf32>
    %c14_16 = arith.constant 14 : index
    %c0_17 = arith.constant 0 : index
    %32 = vector.load %arg8[%c14_16, %c0_17] : memref<16x512xf32, #tpu.memory_space<vmem>>, vector<2x512xf32>
    tpu.vector_store %arg8[%c14_16, %c0_17], %31 {strides = array<i32>} : memref<16x512xf32, #tpu.memory_space<vmem>>, vector<2x512xf32>,
    %c2 = arith.constant 2 : index
    %c0_18 = arith.constant 0 : index
    %33 = vector.load %arg8[%c2, %c0_18] : memref<16x512xf32, #tpu.memory_space<vmem>>, vector<2x512xf32>
    %c12 = arith.constant 12 : index
    %c0_19 = arith.constant 0 : index
    %34 = vector.load %arg8[%c12, %c0_19] : memref<16x512xf32, #tpu.memory_space<vmem>>, vector<2x512xf32>
    %35 = arith.select %26, %33, %34 : vector<2x512xi1>, vector<2x512xf32>
    %c2_20 = arith.constant 2 : index
    %c0_21 = arith.constant 0 : index
    %36 = vector.load %arg8[%c2_20, %c0_21] : memref<16x512xf32, #tpu.memory_space<vmem>>, vector<2x512xf32>
    tpu.vector_store %arg8[%c2_20, %c0_21], %35 {strides = array<i32>} : memref<16x512xf32, #tpu.memory_space<vmem>>, vector<2x512xf32>,
    %37 = arith.select %26, %34, %33 : vector<2x512xi1>, vector<2x512xf32>
    %c12_22 = arith.constant 12 : index
    %c0_23 = arith.constant 0 : index
    %38 = vector.load %arg8[%c12_22, %c0_23] : memref<16x512xf32, #tpu.memory_space<vmem>>, vector<2x512xf32>
    tpu.vector_store %arg8[%c12_22, %c0_23], %37 {strides = array<i32>} : memref<16x512xf32, #tpu.memory_space<vmem>>, vector<2x512xf32>,
    %c4 = arith.constant 4 : index
    %c0_24 = arith.constant 0 : index
    %39 = vector.load %arg8[%c4, %c0_24] : memref<16x512xf32, #tpu.memory_space<vmem>>, vector<2x512xf32>
    %c10 = arith.constant 10 : index
    %c0_25 = arith.constant 0 : index
    %40 = vector.load %arg8[%c10, %c0_25] : memref<16x512xf32, #tpu.memory_space<vmem>>, vector<2x512xf32>
    %41 = arith.select %26, %39, %40 : vector<2x512xi1>, vector<2x512xf32>
    %c4_26 = arith.constant 4 : index
    %c0_27 = arith.constant 0 : index
    %42 = vector.load %arg8[%c4_26, %c0_27] : memref<16x512xf32, #tpu.memory_space<vmem>>, vector<2x512xf32>
    tpu.vector_store %arg8[%c4_26, %c0_27], %41 {strides = array<i32>} : memref<16x512xf32, #tpu.memory_space<vmem>>, vector<2x512xf32>,
    %43 = arith.select %26, %40, %39 : vector<2x512xi1>, vector<2x512xf32>
    %c10_28 = arith.constant 10 : index
    %c0_29 = arith.constant 0 : index
    %44 = vector.load %arg8[%c10_28, %c0_29] : memref<16x512xf32, #tpu.memory_space<vmem>>, vector<2x512xf32>
    tpu.vector_store %arg8[%c10_28, %c0_29], %43 {strides = array<i32>} : memref<16x512xf32, #tpu.memory_space<vmem>>, vector<2x512xf32>,
    %c6 = arith.constant 6 : index
    %c0_30 = arith.constant 0 : index
    %45 = vector.load %arg8[%c6, %c0_30] : memref<16x512xf32, #tpu.memory_space<vmem>>, vector<2x512xf32>
    %c8 = arith.constant 8 : index
    %c0_31 = arith.constant 0 : index
    %46 = vector.load %arg8[%c8, %c0_31] : memref<16x512xf32, #tpu.memory_space<vmem>>, vector<2x512xf32>
    %47 = arith.select %26, %45, %46 : vector<2x512xi1>, vector<2x512xf32>
    %c6_32 = arith.constant 6 : index
    %c0_33 = arith.constant 0 : index
    %48 = vector.load %arg8[%c6_32, %c0_33] : memref<16x512xf32, #tpu.memory_space<vmem>>, vector<2x512xf32>
    tpu.vector_store %arg8[%c6_32, %c0_33], %47 {strides = array<i32>} : memref<16x512xf32, #tpu.memory_space<vmem>>, vector<2x512xf32>,
    %49 = arith.select %26, %46, %45 : vector<2x512xi1>, vector<2x512xf32>
    %c8_34 = arith.constant 8 : index
    %c0_35 = arith.constant 0 : index
    %50 = vector.load %arg8[%c8_34, %c0_35] : memref<16x512xf32, #tpu.memory_space<vmem>>, vector<2x512xf32>
    tpu.vector_store %arg8[%c8_34, %c0_35], %49 {strides = array<i32>} : memref<16x512xf32, #tpu.memory_space<vmem>>, vector<2x512xf32>,
    %c0_36 = arith.constant 0 : index
    %c0_37 = arith.constant 0 : index
    %51 = vector.load %arg3[%c0_36, %c0_37] : memref<128x512xbf16, #tpu.memory_space<vmem>>, vector<128x512xbf16>
    %cst_38 = arith.constant 0.000000e+00 : f32
    %52 = vector.broadcast %cst_38 : f32 to vector<2x128xf32>
    %cst_39 = arith.constant 0.000000e+00 : f32
    %53 = vector.broadcast %cst_39 : f32 to vector<2x128xf32>
    %c0_i32_40 = arith.constant 0 : i32
    %c2_i32 = arith.constant 2 : i32
    %54 = arith.muli %c0_i32_40, %c2_i32 : i32
    %55 = arith.index_cast %54 : i32 to index
    %c0_41 = arith.constant 0 : index
    %56 = vector.load %arg8[%55, %c0_41] : memref<16x512xf32, #tpu.memory_space<vmem>>, vector<2x512xf32>
    %57 = arith.truncf %52 : vector<2x128xf32> to vector<2x128xbf16>
    %cst_42 = arith.constant dense<0.000000e+00> : vector<2x512xf32>
    %58 = tpu.matmul %57, %51, %cst_42 {dimension_numbers = #tpu.dot_dimension_numbers<[1], [0], [0], [1], [0, 0, 1, 1], [], []>} : vector<2x128xbf16>, vector<128x512xbf16>, vector<2x512xf32> -> vector<2x512xf32>
    %59 = arith.addf %56, %58 : vector<2x512xf32>
    %60 = vector.extract_strided_slice %59 {offsets = [0, 0], sizes = [2, 384], strides = [1, 1]} : vector<2x512xf32> to vector<2x384xf32>
    %61 = arith.negf %60 : vector<2x384xf32>
    %62 = math.exp %61 : vector<2x384xf32>
    %cst_43 = arith.constant 1.000000e+00 : f32
    %63 = vector.broadcast %cst_43 : f32 to vector<2x384xf32>
    %64 = arith.addf %63, %62 : vector<2x384xf32>
    %65 = arith.divf %63, %64 : vector<2x384xf32>
    %66 = vector.extract_strided_slice %65 {offsets = [0, 0], sizes = [2, 128], strides = [1, 1]} : vector<2x384xf32> to vector<2x128xf32>
    %67 = vector.extract_strided_slice %65 {offsets = [0, 128], sizes = [2, 128], strides = [1, 1]} : vector<2x384xf32> to vector<2x128xf32>
    %68 = vector.extract_strided_slice %65 {offsets = [0, 256], sizes = [2, 128], strides = [1, 1]} : vector<2x384xf32> to vector<2x128xf32>
    %69 = vector.extract_strided_slice %59 {offsets = [0, 384], sizes = [2, 128], strides = [1, 1]} : vector<2x512xf32> to vector<2x128xf32>
    %70 = math.tanh %69 : vector<2x128xf32>
    %71 = arith.mulf %67, %53 : vector<2x128xf32>
    %72 = arith.mulf %66, %70 : vector<2x128xf32>
    %73 = arith.addf %71, %72 : vector<2x128xf32>
    %74 = math.tanh %73 : vector<2x128xf32>
    %75 = arith.mulf %68, %74 : vector<2x128xf32>
    %c1_i32_44 = arith.constant 1 : i32
    %c2_i32_45 = arith.constant 2 : i32
    %76 = arith.muli %c1_i32_44, %c2_i32_45 : i32
    %77 = arith.index_cast %76 : i32 to index
    %c0_46 = arith.constant 0 : index
    %78 = vector.load %arg8[%77, %c0_46] : memref<16x512xf32, #tpu.memory_space<vmem>>, vector<2x512xf32>
    %79 = arith.truncf %75 : vector<2x128xf32> to vector<2x128xbf16>
    %cst_47 = arith.constant dense<0.000000e+00> : vector<2x512xf32>
    %80 = tpu.matmul %79, %51, %cst_47 {dimension_numbers = #tpu.dot_dimension_numbers<[1], [0], [0], [1], [0, 0, 1, 1], [], []>} : vector<2x128xbf16>, vector<128x512xbf16>, vector<2x512xf32> -> vector<2x512xf32>
    %81 = arith.addf %78, %80 : vector<2x512xf32>
    %82 = vector.extract_strided_slice %81 {offsets = [0, 0], sizes = [2, 384], strides = [1, 1]} : vector<2x512xf32> to vector<2x384xf32>
    %83 = arith.negf %82 : vector<2x384xf32>
    %84 = math.exp %83 : vector<2x384xf32>
    %cst_48 = arith.constant 1.000000e+00 : f32
    %85 = vector.broadcast %cst_48 : f32 to vector<2x384xf32>
    %86 = arith.addf %85, %84 : vector<2x384xf32>
    %87 = arith.divf %85, %86 : vector<2x384xf32>
    %88 = vector.extract_strided_slice %87 {offsets = [0, 0], sizes = [2, 128], strides = [1, 1]} : vector<2x384xf32> to vector<2x128xf32>
    %89 = vector.extract_strided_slice %87 {offsets = [0, 128], sizes = [2, 128], strides = [1, 1]} : vector<2x384xf32> to vector<2x128xf32>
    %90 = vector.extract_strided_slice %87 {offsets = [0, 256], sizes = [2, 128], strides = [1, 1]} : vector<2x384xf32> to vector<2x128xf32>
    %91 = vector.extract_strided_slice %81 {offsets = [0, 384], sizes = [2, 128], strides = [1, 1]} : vector<2x512xf32> to vector<2x128xf32>
    %92 = math.tanh %91 : vector<2x128xf32>
    %93 = arith.mulf %89, %73 : vector<2x128xf32>
    %94 = arith.mulf %88, %92 : vector<2x128xf32>
    %95 = arith.addf %93, %94 : vector<2x128xf32>
    %96 = math.tanh %95 : vector<2x128xf32>
    %97 = arith.mulf %90, %96 : vector<2x128xf32>
    %c2_i32_49 = arith.constant 2 : i32
    %c2_i32_50 = arith.constant 2 : i32
    %98 = arith.muli %c2_i32_49, %c2_i32_50 : i32
    %99 = arith.index_cast %98 : i32 to index
    %c0_51 = arith.constant 0 : index
    %100 = vector.load %arg8[%99, %c0_51] : memref<16x512xf32, #tpu.memory_space<vmem>>, vector<2x512xf32>
    %101 = arith.truncf %97 : vector<2x128xf32> to vector<2x128xbf16>
    %cst_52 = arith.constant dense<0.000000e+00> : vector<2x512xf32>
    %102 = tpu.matmul %101, %51, %cst_52 {dimension_numbers = #tpu.dot_dimension_numbers<[1], [0], [0], [1], [0, 0, 1, 1], [], []>} : vector<2x128xbf16>, vector<128x512xbf16>, vector<2x512xf32> -> vector<2x512xf32>
    %103 = arith.addf %100, %102 : vector<2x512xf32>
    %104 = vector.extract_strided_slice %103 {offsets = [0, 0], sizes = [2, 384], strides = [1, 1]} : vector<2x512xf32> to vector<2x384xf32>
    %105 = arith.negf %104 : vector<2x384xf32>
    %106 = math.exp %105 : vector<2x384xf32>
    %cst_53 = arith.constant 1.000000e+00 : f32
    %107 = vector.broadcast %cst_53 : f32 to vector<2x384xf32>
    %108 = arith.addf %107, %106 : vector<2x384xf32>
    %109 = arith.divf %107, %108 : vector<2x384xf32>
    %110 = vector.extract_strided_slice %109 {offsets = [0, 0], sizes = [2, 128], strides = [1, 1]} : vector<2x384xf32> to vector<2x128xf32>
    %111 = vector.extract_strided_slice %109 {offsets = [0, 128], sizes = [2, 128], strides = [1, 1]} : vector<2x384xf32> to vector<2x128xf32>
    %112 = vector.extract_strided_slice %109 {offsets = [0, 256], sizes = [2, 128], strides = [1, 1]} : vector<2x384xf32> to vector<2x128xf32>
    %113 = vector.extract_strided_slice %103 {offsets = [0, 384], sizes = [2, 128], strides = [1, 1]} : vector<2x512xf32> to vector<2x128xf32>
    %114 = math.tanh %113 : vector<2x128xf32>
    %115 = arith.mulf %111, %95 : vector<2x128xf32>
    %116 = arith.mulf %110, %114 : vector<2x128xf32>
    %117 = arith.addf %115, %116 : vector<2x128xf32>
    %118 = math.tanh %117 : vector<2x128xf32>
    %119 = arith.mulf %112, %118 : vector<2x128xf32>
    %c3_i32 = arith.constant 3 : i32
    %c2_i32_54 = arith.constant 2 : i32
    %120 = arith.muli %c3_i32, %c2_i32_54 : i32
    %121 = arith.index_cast %120 : i32 to index
    %c0_55 = arith.constant 0 : index
    %122 = vector.load %arg8[%121, %c0_55] : memref<16x512xf32, #tpu.memory_space<vmem>>, vector<2x512xf32>
    %123 = arith.truncf %119 : vector<2x128xf32> to vector<2x128xbf16>
    %cst_56 = arith.constant dense<0.000000e+00> : vector<2x512xf32>
    %124 = tpu.matmul %123, %51, %cst_56 {dimension_numbers = #tpu.dot_dimension_numbers<[1], [0], [0], [1], [0, 0, 1, 1], [], []>} : vector<2x128xbf16>, vector<128x512xbf16>, vector<2x512xf32> -> vector<2x512xf32>
    %125 = arith.addf %122, %124 : vector<2x512xf32>
    %126 = vector.extract_strided_slice %125 {offsets = [0, 0], sizes = [2, 384], strides = [1, 1]} : vector<2x512xf32> to vector<2x384xf32>
    %127 = arith.negf %126 : vector<2x384xf32>
    %128 = math.exp %127 : vector<2x384xf32>
    %cst_57 = arith.constant 1.000000e+00 : f32
    %129 = vector.broadcast %cst_57 : f32 to vector<2x384xf32>
    %130 = arith.addf %129, %128 : vector<2x384xf32>
    %131 = arith.divf %129, %130 : vector<2x384xf32>
    %132 = vector.extract_strided_slice %131 {offsets = [0, 0], sizes = [2, 128], strides = [1, 1]} : vector<2x384xf32> to vector<2x128xf32>
    %133 = vector.extract_strided_slice %131 {offsets = [0, 128], sizes = [2, 128], strides = [1, 1]} : vector<2x384xf32> to vector<2x128xf32>
    %134 = vector.extract_strided_slice %131 {offsets = [0, 256], sizes = [2, 128], strides = [1, 1]} : vector<2x384xf32> to vector<2x128xf32>
    %135 = vector.extract_strided_slice %125 {offsets = [0, 384], sizes = [2, 128], strides = [1, 1]} : vector<2x512xf32> to vector<2x128xf32>
    %136 = math.tanh %135 : vector<2x128xf32>
    %137 = arith.mulf %133, %117 : vector<2x128xf32>
    %138 = arith.mulf %132, %136 : vector<2x128xf32>
    %139 = arith.addf %137, %138 : vector<2x128xf32>
    %140 = math.tanh %139 : vector<2x128xf32>
    %141 = arith.mulf %134, %140 : vector<2x128xf32>
    %c4_i32 = arith.constant 4 : i32
    %c2_i32_58 = arith.constant 2 : i32
    %142 = arith.muli %c4_i32, %c2_i32_58 : i32
    %143 = arith.index_cast %142 : i32 to index
    %c0_59 = arith.constant 0 : index
    %144 = vector.load %arg8[%143, %c0_59] : memref<16x512xf32, #tpu.memory_space<vmem>>, vector<2x512xf32>
    %145 = arith.truncf %141 : vector<2x128xf32> to vector<2x128xbf16>
    %cst_60 = arith.constant dense<0.000000e+00> : vector<2x512xf32>
    %146 = tpu.matmul %145, %51, %cst_60 {dimension_numbers = #tpu.dot_dimension_numbers<[1], [0], [0], [1], [0, 0, 1, 1], [], []>} : vector<2x128xbf16>, vector<128x512xbf16>, vector<2x512xf32> -> vector<2x512xf32>
    %147 = arith.addf %144, %146 : vector<2x512xf32>
    %148 = vector.extract_strided_slice %147 {offsets = [0, 0], sizes = [2, 384], strides = [1, 1]} : vector<2x512xf32> to vector<2x384xf32>
    %149 = arith.negf %148 : vector<2x384xf32>
    %150 = math.exp %149 : vector<2x384xf32>
    %cst_61 = arith.constant 1.000000e+00 : f32
    %151 = vector.broadcast %cst_61 : f32 to vector<2x384xf32>
    %152 = arith.addf %151, %150 : vector<2x384xf32>
    %153 = arith.divf %151, %152 : vector<2x384xf32>
    %154 = vector.extract_strided_slice %153 {offsets = [0, 0], sizes = [2, 128], strides = [1, 1]} : vector<2x384xf32> to vector<2x128xf32>
    %155 = vector.extract_strided_slice %153 {offsets = [0, 128], sizes = [2, 128], strides = [1, 1]} : vector<2x384xf32> to vector<2x128xf32>
    %156 = vector.extract_strided_slice %153 {offsets = [0, 256], sizes = [2, 128], strides = [1, 1]} : vector<2x384xf32> to vector<2x128xf32>
    %157 = vector.extract_strided_slice %147 {offsets = [0, 384], sizes = [2, 128], strides = [1, 1]} : vector<2x512xf32> to vector<2x128xf32>
    %158 = math.tanh %157 : vector<2x128xf32>
    %159 = arith.mulf %155, %139 : vector<2x128xf32>
    %160 = arith.mulf %154, %158 : vector<2x128xf32>
    %161 = arith.addf %159, %160 : vector<2x128xf32>
    %162 = math.tanh %161 : vector<2x128xf32>
    %163 = arith.mulf %156, %162 : vector<2x128xf32>
    %c5_i32 = arith.constant 5 : i32
    %c2_i32_62 = arith.constant 2 : i32
    %164 = arith.muli %c5_i32, %c2_i32_62 : i32
    %165 = arith.index_cast %164 : i32 to index
    %c0_63 = arith.constant 0 : index
    %166 = vector.load %arg8[%165, %c0_63] : memref<16x512xf32, #tpu.memory_space<vmem>>, vector<2x512xf32>
    %167 = arith.truncf %163 : vector<2x128xf32> to vector<2x128xbf16>
    %cst_64 = arith.constant dense<0.000000e+00> : vector<2x512xf32>
    %168 = tpu.matmul %167, %51, %cst_64 {dimension_numbers = #tpu.dot_dimension_numbers<[1], [0], [0], [1], [0, 0, 1, 1], [], []>} : vector<2x128xbf16>, vector<128x512xbf16>, vector<2x512xf32> -> vector<2x512xf32>
    %169 = arith.addf %166, %168 : vector<2x512xf32>
    %170 = vector.extract_strided_slice %169 {offsets = [0, 0], sizes = [2, 384], strides = [1, 1]} : vector<2x512xf32> to vector<2x384xf32>
    %171 = arith.negf %170 : vector<2x384xf32>
    %172 = math.exp %171 : vector<2x384xf32>
    %cst_65 = arith.constant 1.000000e+00 : f32
    %173 = vector.broadcast %cst_65 : f32 to vector<2x384xf32>
    %174 = arith.addf %173, %172 : vector<2x384xf32>
    %175 = arith.divf %173, %174 : vector<2x384xf32>
    %176 = vector.extract_strided_slice %175 {offsets = [0, 0], sizes = [2, 128], strides = [1, 1]} : vector<2x384xf32> to vector<2x128xf32>
    %177 = vector.extract_strided_slice %175 {offsets = [0, 128], sizes = [2, 128], strides = [1, 1]} : vector<2x384xf32> to vector<2x128xf32>
    %178 = vector.extract_strided_slice %175 {offsets = [0, 256], sizes = [2, 128], strides = [1, 1]} : vector<2x384xf32> to vector<2x128xf32>
    %179 = vector.extract_strided_slice %169 {offsets = [0, 384], sizes = [2, 128], strides = [1, 1]} : vector<2x512xf32> to vector<2x128xf32>
    %180 = math.tanh %179 : vector<2x128xf32>
    %181 = arith.mulf %177, %161 : vector<2x128xf32>
    %182 = arith.mulf %176, %180 : vector<2x128xf32>
    %183 = arith.addf %181, %182 : vector<2x128xf32>
    %184 = math.tanh %183 : vector<2x128xf32>
    %185 = arith.mulf %178, %184 : vector<2x128xf32>
    %c6_i32 = arith.constant 6 : i32
    %c2_i32_66 = arith.constant 2 : i32
    %186 = arith.muli %c6_i32, %c2_i32_66 : i32
    %187 = arith.index_cast %186 : i32 to index
    %c0_67 = arith.constant 0 : index
    %188 = vector.load %arg8[%187, %c0_67] : memref<16x512xf32, #tpu.memory_space<vmem>>, vector<2x512xf32>
    %189 = arith.truncf %185 : vector<2x128xf32> to vector<2x128xbf16>
    %cst_68 = arith.constant dense<0.000000e+00> : vector<2x512xf32>
    %190 = tpu.matmul %189, %51, %cst_68 {dimension_numbers = #tpu.dot_dimension_numbers<[1], [0], [0], [1], [0, 0, 1, 1], [], []>} : vector<2x128xbf16>, vector<128x512xbf16>, vector<2x512xf32> -> vector<2x512xf32>
    %191 = arith.addf %188, %190 : vector<2x512xf32>
    %192 = vector.extract_strided_slice %191 {offsets = [0, 0], sizes = [2, 384], strides = [1, 1]} : vector<2x512xf32> to vector<2x384xf32>
    %193 = arith.negf %192 : vector<2x384xf32>
    %194 = math.exp %193 : vector<2x384xf32>
    %cst_69 = arith.constant 1.000000e+00 : f32
    %195 = vector.broadcast %cst_69 : f32 to vector<2x384xf32>
    %196 = arith.addf %195, %194 : vector<2x384xf32>
    %197 = arith.divf %195, %196 : vector<2x384xf32>
    %198 = vector.extract_strided_slice %197 {offsets = [0, 0], sizes = [2, 128], strides = [1, 1]} : vector<2x384xf32> to vector<2x128xf32>
    %199 = vector.extract_strided_slice %197 {offsets = [0, 128], sizes = [2, 128], strides = [1, 1]} : vector<2x384xf32> to vector<2x128xf32>
    %200 = vector.extract_strided_slice %197 {offsets = [0, 256], sizes = [2, 128], strides = [1, 1]} : vector<2x384xf32> to vector<2x128xf32>
    %201 = vector.extract_strided_slice %191 {offsets = [0, 384], sizes = [2, 128], strides = [1, 1]} : vector<2x512xf32> to vector<2x128xf32>
    %202 = math.tanh %201 : vector<2x128xf32>
    %203 = arith.mulf %199, %183 : vector<2x128xf32>
    %204 = arith.mulf %198, %202 : vector<2x128xf32>
    %205 = arith.addf %203, %204 : vector<2x128xf32>
    %206 = math.tanh %205 : vector<2x128xf32>
    %207 = arith.mulf %200, %206 : vector<2x128xf32>
    %c7_i32 = arith.constant 7 : i32
    %c2_i32_70 = arith.constant 2 : i32
    %208 = arith.muli %c7_i32, %c2_i32_70 : i32
    %209 = arith.index_cast %208 : i32 to index
    %c0_71 = arith.constant 0 : index
    %210 = vector.load %arg8[%209, %c0_71] : memref<16x512xf32, #tpu.memory_space<vmem>>, vector<2x512xf32>
    %211 = arith.truncf %207 : vector<2x128xf32> to vector<2x128xbf16>
    %cst_72 = arith.constant dense<0.000000e+00> : vector<2x512xf32>
    %212 = tpu.matmul %211, %51, %cst_72 {dimension_numbers = #tpu.dot_dimension_numbers<[1], [0], [0], [1], [0, 0, 1, 1], [], []>} : vector<2x128xbf16>, vector<128x512xbf16>, vector<2x512xf32> -> vector<2x512xf32>
    %213 = arith.addf %210, %212 : vector<2x512xf32>
    %214 = vector.extract_strided_slice %213 {offsets = [0, 0], sizes = [2, 384], strides = [1, 1]} : vector<2x512xf32> to vector<2x384xf32>
    %215 = arith.negf %214 : vector<2x384xf32>
    %216 = math.exp %215 : vector<2x384xf32>
    %cst_73 = arith.constant 1.000000e+00 : f32
    %217 = vector.broadcast %cst_73 : f32 to vector<2x384xf32>
    %218 = arith.addf %217, %216 : vector<2x384xf32>
    %219 = arith.divf %217, %218 : vector<2x384xf32>
    %220 = vector.extract_strided_slice %219 {offsets = [0, 0], sizes = [2, 128], strides = [1, 1]} : vector<2x384xf32> to vector<2x128xf32>
    %221 = vector.extract_strided_slice %219 {offsets = [0, 128], sizes = [2, 128], strides = [1, 1]} : vector<2x384xf32> to vector<2x128xf32>
    %222 = vector.extract_strided_slice %219 {offsets = [0, 256], sizes = [2, 128], strides = [1, 1]} : vector<2x384xf32> to vector<2x128xf32>
    %223 = vector.extract_strided_slice %213 {offsets = [0, 384], sizes = [2, 128], strides = [1, 1]} : vector<2x512xf32> to vector<2x128xf32>
    %224 = math.tanh %223 : vector<2x128xf32>
    %225 = arith.mulf %221, %205 : vector<2x128xf32>
    %226 = arith.mulf %220, %224 : vector<2x128xf32>
    %227 = arith.addf %225, %226 : vector<2x128xf32>
    %228 = math.tanh %227 : vector<2x128xf32>
    %229 = arith.mulf %222, %228 : vector<2x128xf32>
    %c8_i32 = arith.constant 8 : i32
    %c0_74 = arith.constant 0 : index
    %c0_75 = arith.constant 0 : index
    %230 = vector.load %arg5[%c0_74, %c0_75] : memref<1x128xf32, #tpu.memory_space<vmem>>, vector<1x128xf32>
    %231 = vector.broadcast %230 : vector<1x128xf32> to vector<2x128xf32>
    %232 = arith.mulf %229, %231 : vector<2x128xf32>
    %cst_76 = arith.constant dense<0.000000e+00> : vector<2xf32>
    %233 = vector.multi_reduction <add>, %232, %cst_76 [1] : vector<2x128xf32> to vector<2xf32>
    %234 = vector.shape_cast %233 : vector<2xf32> to vector<2x1xf32>
    %c0_77 = arith.constant 0 : index
    %c0_78 = arith.constant 0 : index
    %235 = vector.load %arg6[%c0_77, %c0_78] : memref<1x1xf32, #tpu.memory_space<vmem>>, vector<1x1xf32>
    %236 = vector.broadcast %235 : vector<1x1xf32> to vector<2x1xf32>
    %237 = arith.addf %234, %236 : vector<2x1xf32>
    %c0_79 = arith.constant 0 : index
    %c0_80 = arith.constant 0 : index
    %c0_81 = arith.constant 0 : index
    %238 = vector.load %arg7[%c0_79, %c0_80, %c0_81] : memref<1x2x1xf32, #tpu.memory_space<vmem>>, vector<1x2x1xf32>
    %239 = vector.shape_cast %238 : vector<1x2x1xf32> to vector<2x1xf32>
    %240 = vector.shape_cast %237 : vector<2x1xf32> to vector<1x2x1xf32>
    tpu.vector_store %arg7[%c0_79, %c0_80, %c0_81], %240 {strides = array<i32>} : memref<1x2x1xf32, #tpu.memory_space<vmem>>, vector<1x2x1xf32>,
    return
  }
  func.func @transform_0(%arg0: i32) -> (i32, i32, i32) {
    %c0_i32 = arith.constant 0 : i32
    %c0_i32_0 = arith.constant 0 : i32
    %c0_i32_1 = arith.constant 0 : i32
    return %arg0, %c0_i32, %c0_i32_0 : i32, i32, i32
  }
  func.func @transform_1(%arg0: i32) -> (i32, i32) {
    %c0_i32 = arith.constant 0 : i32
    %c0_i32_0 = arith.constant 0 : i32
    %c0_i32_1 = arith.constant 0 : i32
    return %c0_i32, %c0_i32_0 : i32, i32
  }
  func.func @transform_2(%arg0: i32) -> (i32, i32) {
    %c0_i32 = arith.constant 0 : i32
    %c0_i32_0 = arith.constant 0 : i32
    %c0_i32_1 = arith.constant 0 : i32
    return %c0_i32, %c0_i32_0 : i32, i32
  }
  func.func @transform_3(%arg0: i32) -> (i32, i32) {
    %c0_i32 = arith.constant 0 : i32
    %c0_i32_0 = arith.constant 0 : i32
    %c0_i32_1 = arith.constant 0 : i32
    return %c0_i32, %c0_i32_0 : i32, i32
  }
  func.func @transform_4(%arg0: i32) -> (i32, i32) {
    %c0_i32 = arith.constant 0 : i32
    %c0_i32_0 = arith.constant 0 : i32
    %c0_i32_1 = arith.constant 0 : i32
    return %c0_i32, %c0_i32_0 : i32, i32
  }
  func.func @transform_5(%arg0: i32) -> (i32, i32) {
    %c0_i32 = arith.constant 0 : i32
    %c0_i32_0 = arith.constant 0 : i32
    %c0_i32_1 = arith.constant 0 : i32
    return %c0_i32, %c0_i32_0 : i32, i32
  }
  func.func @transform_6(%arg0: i32) -> (i32, i32, i32) {
    %c0_i32 = arith.constant 0 : i32
    %c0_i32_0 = arith.constant 0 : i32
    %c0_i32_1 = arith.constant 0 : i32
    return %arg0, %c0_i32, %c0_i32_0 : i32, i32, i32
  }
}

</mosaic_0001>

<bundles_post_ra>
// kernel: lstm_forward.1
= control target key start
LH: loop header
LB: loop body
LE: loop exit
PB: predicated region body
PF: predicated region fallthrough
CT: control target
= control target key end

     0   :  { %s2834_s0 = inlined_call_operand.vmem [shape: bf16[1,16,128], index: 0, kind: input, shape index: {}]   ;;  %s2835_s1 = inlined_call_operand.hbm [shape: bf16[128,512], index: 1, kind: input, shape index: {}]   ;;  %s2836_s2 = inlined_call_operand.hbm [shape: bf16[128,512], index: 2, kind: input, shape index: {}]   ;;  %s2837_s3 = inlined_call_operand.vmem [shape: f32[1,512], index: 3, kind: input, shape index: {}]   ;;  %s2838_s4 = inlined_call_operand.vmem [shape: f32[1,128], index: 4, kind: input, shape index: {}]   ;;  %s2839_s5 = inlined_call_operand.<no memory space> [shape: f32[1,1], index: 5, kind: input, shape index: {}]   ;;  %s2840_s6 = inlined_call_operand.vmem [shape: f32[1,2,1], index: 6, kind: output, shape index: {}]  }
   0x1   :  { %v11_v0 = vstv %s2839_s5 }
   0x2   :  { %12 = vst [vmem:[#allocation3] sm:$0x1] %v11_v0 }
   0x3   :  { %13 = vsyncpa [#allocation5], 0 }
   0x4   :  { %14 = vsyncpa [#allocation7], 0  ;;  %s2263_s23 = smov [#allocation4]  }
   0x5   :  { %s22_s24 = sshll.u32 %s2263_s23, 4  ;;  %s23_s24 = int_to_ptr.vmem [resolvable:$true] %s22_s24 }
   0x6   :  { %s2227_s25 = scalar_lea.vmem %s23_s24, 4096  ;;  %p2232_p1 = scmp.lt.s32.totalorder %s23_s24, %s23_s24 }
   0x7   :  { %p2228_p0 = scmp.ne.s32.totalorder %s23_s24, %s2227_s25  ;;  %p2233_p2 = scmp.lt.s32.totalorder %s2227_s25, %s2227_s25 }
   0x9   :  { %p2234_p3 = por %p2233_p2, %p2232_p1 }
   0xb   :  { %p2235_p4 = pnand %p2234_p3, %p2228_p0 }
   0xd   :  { %2238 = shalt.err (!%p2235_p4)
}
   0xe   :  { %s2264_s26 = smov 256   ;;  %s2265_s27 = smov 16  }
   0xf   :  { %28 = dma.hbm_to_vmem [thread:$0]  %s2835_s1, 4096, %s23_s24, [#allocation5], %s2264_s26, %s2264_s26, %s2265_s27  }
  0x10   :  { %s2266_s5 = smov [#allocation6]  }
  0x11   :  { %s34_s30 = sshll.u32 %s2266_s5, 4  ;;  %s35_s30 = int_to_ptr.vmem [resolvable:$true] %s34_s30 }
  0x12   :  { %s2247_s7 = scalar_lea.vmem %s35_s30, 4096  ;;  %p2252_p6 = scmp.lt.s32.totalorder %s35_s30, %s35_s30 }
  0x13   :  { %p2248_p5 = scmp.ne.s32.totalorder %s35_s30, %s2247_s7  ;;  %p2253_p7 = scmp.lt.s32.totalorder %s2247_s7, %s2247_s7 }
  0x15   :  { %p2254_p8 = por %p2253_p7, %p2252_p6 }
  0x17   :  { %p2255_p9 = pnand %p2254_p8, %p2248_p5 }
  0x19   :  { %2258 = shalt.err (!%p2255_p9)
}
  0x1a   :  { %40 = dma.hbm_to_vmem [thread:$0]  %s2836_s2, 4096, %s35_s30, [#allocation7], %s2264_s26, %s2264_s26, %s2265_s27  }
  0x1b   :  { %2259 = dma.done.wait [#allocation5], 4096  }
  0x1c   :  { %2260 = vsyncadd [#allocation5], 4294963200 }
  0x1d   :  { %2261 = dma.done.wait [#allocation7], 4096  }
  0x1e   :  { %2262 = vsyncadd [#allocation7], 4294963200  ;;  %v2841_v1 = vmov 0   ;;  %v1962_v2 = vld [vmem:[#allocation4 + $0xe4] ss:$16 sps:$4 sm:$0xff]   ;;  %vm1846_vm4 = vcmask 1047558  }
  0x1f   :  { %308 = vmatprep.mubr.bf16.mxu0 %v2841_v1  ;;  %351 = vmatprep.mubr.bf16.mxu1 %v2841_v1  ;;  %v1964_v3 = vld [vmem:[#allocation4 + $0xe0] ss:$16 sps:$4 sm:$0xff]   ;;  %v1965_v4 = vld [vmem:[#allocation4 + $0xc4] ss:$16 sps:$4 sm:$0xff]   ;;  %v1967_v5 = vld [vmem:[#allocation4 + $0xec] ss:$16 sps:$4 sm:$0xff]  }
  0x20   :  { %276 = vmatprep.subr.bf16.mxu0 %v1962_v2  ;;  %v1969_v6 = vld [vmem:[#allocation4 + $0xc0] ss:$16 sps:$4 sm:$0xff]   ;;  %v1970_v7 = vld [vmem:[#allocation4 + $0xe8] ss:$16 sps:$4 sm:$0xff]   ;;  %v1971_v8 = vld [vmem:[#allocation4 + $0xa4] ss:$16 sps:$4 sm:$0xff]   ;;  %319 = vmatprep.subr.bf16.mxu1 %v1967_v5 }
  0x21   :  { %277 = vmatpush1.bf16.msra.mxu0 %v1964_v3  ;;  %v1973_v9 = vld [vmem:[#allocation4 + $0xcc] ss:$16 sps:$4 sm:$0xff]   ;;  %320 = vmatpush1.bf16.msra.mxu1 %v1970_v7  ;;  %v1976_v10 = vld [vmem:[#allocation4 + $0xc8] ss:$16 sps:$4 sm:$0xff]   ;;  %v1975_v11 = vld [vmem:[#allocation4 + $0xa0] ss:$16 sps:$4 sm:$0xff]  }
  0x22   :  { %278 = vmatprep.subr.bf16.mxu0 %v1965_v4  ;;  %321 = vmatprep.subr.bf16.mxu1 %v1973_v9  ;;  %v1977_v12 = vld [vmem:[#allocation4 + $0x84] ss:$16 sps:$4 sm:$0xff]   ;;  %v1979_v13 = vld [vmem:[#allocation4 + $0xac] ss:$16 sps:$4 sm:$0xff]   ;;  %v1982_v14 = vld [vmem:[#allocation4 + $0xa8] ss:$16 sps:$4 sm:$0xff]   ;;  %v90_v4 = vlaneseq }
  0x23   :  { %v1981_v15 = vld [vmem:[#allocation4 + $0x80] ss:$16 sps:$4 sm:$0xff]   ;;  %v1985_v16 = vld [vmem:[#allocation4 + $0x8c] ss:$16 sps:$4 sm:$0xff]   ;;  %v1983_v17 = vld [vmem:[#allocation4 + $0x64] ss:$16 sps:$4 sm:$0xff]  }
  0x24   :  { %v1987_v18 = vld [vmem:[#allocation4 + $0x60] ss:$16 sps:$4 sm:$0xff]   ;;  %v1988_v19 = vld [vmem:[#allocation4 + $0x88] ss:$16 sps:$4 sm:$0xff]   ;;  %v1991_v20 = vld [vmem:[#allocation4 + $0x6c] ss:$16 sps:$4 sm:$0xff]  }
  0x25   :  { %279 = vmatpush1.bf16.msra.mxu0 %v1969_v6  ;;  %322 = vmatpush1.bf16.msra.mxu1 %v1976_v10  ;;  %v1989_v21 = vld [vmem:[#allocation4 + $0x44] ss:$16 sps:$4 sm:$0xff]   ;;  %v1994_v22 = vld [vmem:[#allocation4 + $0x68] ss:$16 sps:$4 sm:$0xff]   ;;  %v1993_v23 = vld [vmem:[#allocation4 + $0x40] ss:$16 sps:$4 sm:$0xff]  }
  0x26   :  { %280 = vmatprep.subr.bf16.mxu0 %v1971_v8  ;;  %323 = vmatprep.subr.bf16.mxu1 %v1979_v13  ;;  %v1997_v24 = vld [vmem:[#allocation4 + $0x4c] ss:$16 sps:$4 sm:$0xff]   ;;  %v1995_v25 = vld [vmem:[#allocation4 + $0x24] ss:$16 sps:$4 sm:$0xff]   ;;  %v2000_v26 = vld [vmem:[#allocation4 + $0x48] ss:$16 sps:$4 sm:$0xff]  }
  0x27   :  { %v1999_v27 = vld [vmem:[#allocation4 + $0x20] ss:$16 sps:$4 sm:$0xff]   ;;  %v2003_v28 = vld [vmem:[#allocation4 + $0x2c] ss:$16 sps:$4 sm:$0xff]   ;;  %v2001_v29 = vld [vmem:[#allocation4 + $0x4] ss:$16 sps:$4 sm:$0xff]  }
  0x28   :  { %v2005_v30 = vld [vmem:[#allocation4] ss:$16 sps:$4 sm:$0xff]   ;;  %v2006_v31 = vld [vmem:[#allocation4 + $0x28] ss:$16 sps:$4 sm:$0xff]   ;;  %v2008_v32 = vld [vmem:[#allocation4 + $0xc] ss:$16 sps:$4 sm:$0xff]  }
  0x29   :  { %281 = vmatpush1.bf16.msra.mxu0 %v1975_v11  ;;  %324 = vmatpush1.bf16.msra.mxu1 %v1982_v14  ;;  %v2314_v33 = vld [vmem:[#allocation6 + $0xe4] ss:$16 sps:$4 sm:$0xff]   ;;  %v2012_v35 = vld [vmem:[#allocation4 + $0x8] ss:$16 sps:$4 sm:$0xff]   ;;  %v2319_v36 = vld [vmem:[#allocation6 + $0xe0] ss:$16 sps:$4 sm:$0xff]  }
  0x2a   :  { %282 = vmatprep.subr.bf16.mxu0 %v1977_v12  ;;  %325 = vmatprep.subr.bf16.mxu1 %v1985_v16  ;;  %v2007_v34 = vld [vmem:[%s2834_s0] sm:$0xff]   ;;  %v2328_v40 = vld [vmem:[#allocation6 + $0xe8] ss:$16 sps:$4 sm:$0xff]   ;;  %v91_v5 = vshrl.u32 %v90_v4, 7  ;;  %v2456_v16 = vand.u32 127, %v90_v4  ;;  %vm1858_vm5 = vcmask 7174  }
  0x2b   :  { %v2321_v37 = vld [vmem:[#allocation6 + $0xec] ss:$16 sps:$4 sm:$0xff]   ;;  %v2324_v38 = vld [vmem:[#allocation6 + $0xc4] ss:$16 sps:$4 sm:$0xff]   ;;  %v2326_v39 = vld [vmem:[#allocation6 + $0xc0] ss:$16 sps:$4 sm:$0xff]  }
  0x2c   :  { %2845 = vst [vmem:[#allocation10_spill] sm:$0xff] %v2321_v37  ;;  %v2332_v41 = vld [vmem:[#allocation6 + $0xcc] ss:$16 sps:$4 sm:$0xff]   ;;  %v2335_v42 = vld [vmem:[#allocation6 + $0xa4] ss:$16 sps:$4 sm:$0xff]   ;;  %v92_v6 = vsub.s32 0, %v91_v5 }
  0x2d   :  { %283 = vmatpush1.bf16.msra.mxu0 %v1981_v15  ;;  %326 = vmatpush1.bf16.msra.mxu1 %v1988_v19  ;;  %v2339_v43 = vld [vmem:[#allocation6 + $0xc8] ss:$16 sps:$4 sm:$0xff]   ;;  %v2344_v44 = vld [vmem:[#allocation6 + $0xa0] ss:$16 sps:$4 sm:$0xff]   ;;  %v2346_v45 = vld [vmem:[#allocation6 + $0xac] ss:$16 sps:$4 sm:$0xff]  }
  0x2e   :  { %284 = vmatprep.subr.bf16.mxu0 %v1983_v17  ;;  %327 = vmatprep.subr.bf16.mxu1 %v1991_v20  ;;  %v2349_v46 = vld [vmem:[#allocation6 + $0x84] ss:$16 sps:$4 sm:$0xff]   ;;  %v2352_v47 = vld [vmem:[#allocation6 + $0xa8] ss:$16 sps:$4 sm:$0xff]   ;;  %v2356_v48 = vld [vmem:[#allocation6 + $0x80] ss:$16 sps:$4 sm:$0xff]  }
  0x2f   :  { %v2358_v49 = vld [vmem:[#allocation6 + $0x8c] ss:$16 sps:$4 sm:$0xff]   ;;  %v2361_v50 = vld [vmem:[#allocation6 + $0x64] ss:$16 sps:$4 sm:$0xff]   ;;  %v2364_v51 = vld [vmem:[#allocation6 + $0x88] ss:$16 sps:$4 sm:$0xff]  }
  0x30   :  { %v2368_v52 = vld [vmem:[#allocation6 + $0x60] ss:$16 sps:$4 sm:$0xff]   ;;  %v2370_v53 = vld [vmem:[#allocation6 + $0x6c] ss:$16 sps:$4 sm:$0xff]   ;;  %v2373_v54 = vld [vmem:[#allocation6 + $0x44] ss:$16 sps:$4 sm:$0xff]  }
  0x31   :  { %285 = vmatpush1.bf16.msra.mxu0 %v1987_v18  ;;  %328 = vmatpush1.bf16.msra.mxu1 %v1994_v22  ;;  %v2376_v55 = vld [vmem:[#allocation6 + $0x68] ss:$16 sps:$4 sm:$0xff]   ;;  %v2380_v56 = vld [vmem:[#allocation6 + $0x40] ss:$16 sps:$4 sm:$0xff]   ;;  %v2382_v57 = vld [vmem:[#allocation6 + $0x4c] ss:$16 sps:$4 sm:$0xff]  }
  0x32   :  { %286 = vmatprep.subr.bf16.mxu0 %v1989_v21  ;;  %329 = vmatprep.subr.bf16.mxu1 %v1997_v24  ;;  %v2385_v58 = vld [vmem:[#allocation6 + $0x24] ss:$16 sps:$4 sm:$0xff]   ;;  %v2388_v59 = vld [vmem:[#allocation6 + $0x48] ss:$16 sps:$4 sm:$0xff]   ;;  %v2392_v60 = vld [vmem:[#allocation6 + $0x20] ss:$16 sps:$4 sm:$0xff]  }
  0x33   :  { %v2394_v61 = vld [vmem:[#allocation6 + $0x2c] ss:$16 sps:$4 sm:$0xff]   ;;  %v2397_v62 = vld [vmem:[#allocation6 + $0x4] ss:$16 sps:$4 sm:$0xff]   ;;  %v2400_v63 = vld [vmem:[#allocation6 + $0x28] ss:$16 sps:$4 sm:$0xff]  }
  0x34   :  { %v2404_v0 = vld [vmem:[#allocation6] ss:$16 sps:$4 sm:$0xff]   ;;  %v2406_v2 = vld [vmem:[#allocation6 + $0xc] ss:$16 sps:$4 sm:$0xff]   ;;  %v2410_v3 = vld [vmem:[#allocation6 + $0x8] ss:$16 sps:$4 sm:$0xff]  }
  0x35   :  { %287 = vmatpush1.bf16.msra.mxu0 %v1993_v23  ;;  %330 = vmatpush1.bf16.msra.mxu1 %v2000_v26  ;;  %v88_v7 = vld [vmem:[%s2837_s3] sm:$0xf]  ;;  %v96_v8 = vsub.s32 1, %v91_v5  ;;  %v100_v9 = vsub.s32 2, %v91_v5  ;;  %v104_v11 = vsub.s32 3, %v91_v5  ;;  %v372_v23 = vadd.s32 128, %v2456_v16 }
  0x36   :  { %288 = vmatprep.subr.bf16.mxu0 %v1995_v25  ;;  %331 = vmatprep.subr.bf16.mxu1 %v2003_v28  ;;  %v93_v10 = vrot.slane %v88_v7, %v92_v6  ;;  %v373_v24 = vadd.s32 256, %v2456_v16  ;;  %vm423_vm0 = vcmp.lt.s32.totalorder %v2456_v16, 64 }
  0x37   :  { %v97_v12 = vrot.slane %v88_v7, %v96_v8  ;;  %v101_v14 = vrot.slane %v88_v7, %v100_v9  ;;  %v105_v18 = vrot.slane %v88_v7, %v104_v11 }
  0x39   :  { %289 = vmatpush1.bf16.msra.mxu0 %v1999_v27  ;;  %332 = vmatpush1.bf16.msra.mxu1 %v2006_v31 }
  0x3a   :  { %290 = vmatprep.subr.bf16.mxu0 %v2001_v29  ;;  %333 = vmatprep.subr.bf16.mxu1 %v2008_v32  ;;  %v374_v29 = vadd.s32 384, %v2456_v16 }
  0x3c   :  { %v400_v9 = vand.u32 127, %v374_v29 }
  0x3d   :  { %291 = vmatpush1.bf16.msra.mxu0 %v2005_v30  ;;  %334 = vmatpush1.bf16.msra.mxu1 %v2012_v35  ;;  %v393_v35 = vand.u32 127, %v373_v24 }
  0x3e   :  { %815 = vmatprep.subr.bf16.mxu0 %v2314_v33  ;;  %856 = vmatprep.subr.bf16.mxu1 %v2321_v37  ;;  %vm2470_vm3 = vcmp.lt.s32.totalorder %v400_v9, 64 }
  0x3f   :  { %vm2466_vm2 = vcmp.lt.s32.totalorder %v393_v35, 64 }
  0x40   :  { %309 = vmatmul.mubr.bf16.vlgmr.msra.gmra.mxu0 %v2007_v34  ;;  %352 = vmatmul.mubr.bf16.vlgmr.msra.gmra.mxu1 %v2007_v34  ;;  %v386_v34 = vand.u32 127, %v372_v23 }
  0x41   :  { %816 = vmatpush1.bf16.msra.mxu0 %v2319_v36  ;;  %847 = vmatprep.mubr.bf16.mxu0 %v2841_v1 }
  0x42   :  { %817 = vmatprep.subr.bf16.mxu0 %v2324_v38  ;;  %857 = vmatpush1.bf16.msra.mxu1 %v2328_v40  ;;  %vm2462_vm1 = vcmp.lt.s32.totalorder %v386_v34, 64 }
  0x43   :  { %888 = vmatprep.mubr.bf16.mxu1 %v2841_v1  ;;  %858 = vmatprep.subr.bf16.mxu1 %v2332_v41 }
  0x45   :  { %818 = vmatpush1.bf16.msra.mxu0 %v2326_v39 }
  0x46   :  { %819 = vmatprep.subr.bf16.mxu0 %v2335_v42  ;;  %859 = vmatpush1.bf16.msra.mxu1 %v2339_v43 }
  0x47   :  { %860 = vmatprep.subr.bf16.mxu1 %v2346_v45 }
  0x49   :  { %820 = vmatpush1.bf16.msra.mxu0 %v2344_v44 }
  0x4a   :  { %821 = vmatprep.subr.bf16.mxu0 %v2349_v46  ;;  %861 = vmatpush1.bf16.msra.mxu1 %v2352_v47 }
  0x4b   :  { %862 = vmatprep.subr.bf16.mxu1 %v2358_v49 }
  0x4d   :  { %822 = vmatpush1.bf16.msra.mxu0 %v2356_v48 }
  0x4e   :  { %823 = vmatprep.subr.bf16.mxu0 %v2361_v50  ;;  %863 = vmatpush1.bf16.msra.mxu1 %v2364_v51 }
  0x4f   :  { %864 = vmatprep.subr.bf16.mxu1 %v2370_v53 }
  0x51   :  { %824 = vmatpush1.bf16.msra.mxu0 %v2368_v52 }
  0x52   :  { %825 = vmatprep.subr.bf16.mxu0 %v2373_v54  ;;  %865 = vmatpush1.bf16.msra.mxu1 %v2376_v55 }
  0x53   :  { %866 = vmatprep.subr.bf16.mxu1 %v2382_v57 }
  0x55   :  { %826 = vmatpush1.bf16.msra.mxu0 %v2380_v56 }
  0x56   :  { %827 = vmatprep.subr.bf16.mxu0 %v2385_v58  ;;  %867 = vmatpush1.bf16.msra.mxu1 %v2388_v59 }
  0x57   :  { %868 = vmatprep.subr.bf16.mxu1 %v2394_v61 }
  0x59   :  { %828 = vmatpush1.bf16.msra.mxu0 %v2392_v60 }
  0x5a   :  { %829 = vmatprep.subr.bf16.mxu0 %v2397_v62  ;;  %869 = vmatpush1.bf16.msra.mxu1 %v2400_v63 }
  0x5b   :  { %870 = vmatprep.subr.bf16.mxu1 %v2406_v2 }
  0x5d   :  { %830 = vmatpush1.bf16.msra.mxu0 %v2404_v0 }
  0x5e   :  { %930 = vmatprep.subr.bf16.mxu0 %v2314_v33  ;;  %871 = vmatpush1.bf16.msra.mxu1 %v2410_v3 }
  0x5f   :  { %971 = vmatprep.subr.bf16.mxu1 %v2321_v37 }
  0x60   :  { %848 = vmatmul.mubr.bf16.vlgmr.msra.gmra.mxu0 %v2841_v1 }
  0x61   :  { %931 = vmatpush1.bf16.msra.mxu0 %v2319_v36  ;;  %962 = vmatprep.mubr.bf16.mxu0 %v2841_v1 }
  0x62   :  { %932 = vmatprep.subr.bf16.mxu0 %v2324_v38  ;;  %889 = vmatmul.mubr.bf16.vlgmr.msra.gmra.mxu1 %v2841_v1 }
  0x63   :  { %972 = vmatpush1.bf16.msra.mxu1 %v2328_v40  ;;  %1003 = vmatprep.mubr.bf16.mxu1 %v2841_v1 }
  0x64   :  { %973 = vmatprep.subr.bf16.mxu1 %v2332_v41 }
  0x65   :  { %933 = vmatpush1.bf16.msra.mxu0 %v2326_v39 }
  0x66   :  { %934 = vmatprep.subr.bf16.mxu0 %v2335_v42 }
  0x67   :  { %974 = vmatpush1.bf16.msra.mxu1 %v2339_v43 }
  0x68   :  { %975 = vmatprep.subr.bf16.mxu1 %v2346_v45 }
  0x69   :  { %935 = vmatpush1.bf16.msra.mxu0 %v2344_v44 }
  0x6a   :  { %936 = vmatprep.subr.bf16.mxu0 %v2349_v46 }
  0x6b   :  { %976 = vmatpush1.bf16.msra.mxu1 %v2352_v47 }
  0x6c   :  { %977 = vmatprep.subr.bf16.mxu1 %v2358_v49 }
  0x6d   :  { %937 = vmatpush1.bf16.msra.mxu0 %v2356_v48 }
  0x6e   :  { %938 = vmatprep.subr.bf16.mxu0 %v2361_v50 }
  0x6f   :  { %978 = vmatpush1.bf16.msra.mxu1 %v2364_v51 }
  0x70   :  { %979 = vmatprep.subr.bf16.mxu1 %v2370_v53 }
  0x71   :  { %939 = vmatpush1.bf16.msra.mxu0 %v2368_v52 }
  0x72   :  { %940 = vmatprep.subr.bf16.mxu0 %v2373_v54 }
  0x73   :  { %980 = vmatpush1.bf16.msra.mxu1 %v2376_v55 }
  0x74   :  { %981 = vmatprep.subr.bf16.mxu1 %v2382_v57 }
  0x75   :  { %941 = vmatpush1.bf16.msra.mxu0 %v2380_v56 }
  0x76   :  { %942 = vmatprep.subr.bf16.mxu0 %v2385_v58 }
  0x77   :  { %982 = vmatpush1.bf16.msra.mxu1 %v2388_v59 }
  0x78   :  { %983 = vmatprep.subr.bf16.mxu1 %v2394_v61 }
  0x79   :  { %943 = vmatpush1.bf16.msra.mxu0 %v2392_v60 }
  0x7a   :  { %944 = vmatprep.subr.bf16.mxu0 %v2397_v62 }
  0x7b   :  { %984 = vmatpush1.bf16.msra.mxu1 %v2400_v63 }
  0x7c   :  { %985 = vmatprep.subr.bf16.mxu1 %v2406_v2 }
  0x7d   :  { %945 = vmatpush1.bf16.msra.mxu0 %v2404_v0 }
  0x7e   :  { %1063 = vmatprep.subr.bf16.mxu0 %v2314_v33 }
  0x7f   :  { %986 = vmatpush1.bf16.msra.mxu1 %v2410_v3 }
  0x80   :  { %1104 = vmatprep.subr.bf16.mxu1 %v2321_v37 }
 0x100   :  { %v310_v13 = vpop.f32.mrf.mxu0  ;;  %v353_v20 = vpop.f32.mrf.mxu1 }
 0x101   :  { %v311_v15 = vadd.f32 %v310_v13, %v93_v10  ;;  %v354_v22 = vadd.f32 %v353_v20, %v101_v14 }
 0x102   :  { %v312_v17 = vpop.f32.mrf.mxu0  ;;  %v355_v26 = vpop.f32.mrf.mxu1 }
 0x103   :  { %362 = vst [vmem:[#allocation2 + $0x30] sm:$0xff] %v311_v15  ;;  %v313_v19 = vadd.f32 %v312_v17, %v97_v12  ;;  %364 = vst [vmem:[#allocation2 + $0x18] sm:$0xff] %v354_v22  ;;  %v356_v28 = vadd.f32 %v355_v26, %v105_v18 }
 0x104   :  { %v314_v21 = vpop.f32.mrf.mxu0  ;;  %v357_v31 = vpop.f32.mrf.mxu1 }
 0x105   :  { %363 = vst [vmem:[#allocation2] sm:$0xff] %v313_v19  ;;  %v315_v25 = vadd.f32 %v314_v21, %v93_v10  ;;  %365 = vst [vmem:[#allocation2 + $0x10] sm:$0xff] %v356_v28  ;;  %v358_v32 = vadd.f32 %v357_v31, %v101_v14 }
 0x106   :  { %v316_v27 = vpop.f32.mrf.mxu0  ;;  %v359_v4 = vpop.f32.mrf.mxu1 }
 0x107   :  { %366 = vst [vmem:[#allocation2 + $0x8] sm:$0xff] %v315_v25  ;;  %v317_v30 = vadd.f32 %v316_v27, %v97_v12  ;;  %368 = vst [vmem:[#allocation2 + $0x28] sm:$0xff] %v358_v32  ;;  %v360_v8 = vadd.f32 %v359_v4, %v105_v18 }
 0x109   :  { %367 = vst [vmem:[#allocation2 + $0x20] sm:$0xff] %v317_v30  ;;  %369 = vst [vmem:[#allocation2 + $0x38] sm:$0xff] %v360_v8 }
 0x10a   :  { %v427_v5 = vld [vmem:[#allocation2 + $0x30] sm:$0x3]  ;;  %v475_v6 = vld [vmem:[#allocation2 + $0x30] sm:$0xc]  ;;  %v523_v7 = vld [vmem:[#allocation2 + $0x30] sm:$0x30] }
 0x10b   :  { %v459_v10 = vrot.slane %v427_v5, 2  ;;  %v507_v11 = vrot.slane %v475_v6, 6  ;;  %v571_v13 = vld [vmem:[#allocation2 + $0x30] sm:$0xc0]  ;;  %v555_v15 = vrot.slane %v523_v7, 2 }
 0x10c   :  { %v603_v12 = vrot.slane %v571_v13, 6  ;;  %v428_v17 = vld [vmem:[#allocation2] sm:$0x3]  ;;  %v476_v19 = vld [vmem:[#allocation2] sm:$0xc] }
 0x10d   :  { %v460_v18 = vrot.slane %v428_v17, 2  ;;  %v508_v21 = vrot.slane %v476_v19, 6  ;;  %v524_v25 = vld [vmem:[#allocation2] sm:$0x30]  ;;  %v572_v32 = vld [vmem:[#allocation2] sm:$0xc0] }
 0x10e   :  { %v431_v22 = vld [vmem:[#allocation2 + $0x8] sm:$0xc0]  ;;  %v479_v23 = vld [vmem:[#allocation2 + $0x8] sm:$0x30]  ;;  %v527_v24 = vld [vmem:[#allocation2 + $0x8] sm:$0xc] }
 0x10f   :  { %v439_v27 = vrot.slane %v431_v22, 6  ;;  %v467_v28 = vsel %vm423_vm0, %v431_v22, %v459_v10  ;;  %v487_v29 = vrot.slane %v479_v23, 2  ;;  %v515_v30 = vsel %vm423_vm0, %v479_v23, %v507_v11  ;;  %v575_v31 = vld [vmem:[#allocation2 + $0x8] sm:$0x3]  ;;  %v429_v34 = vld [vmem:[#allocation2 + $0x18] sm:$0x3] }
 0x110   :  { %471 = vst [vmem:[#allocation2 + $0x8] sm:$0xc0] %v467_v28  ;;  %519 = vst [vmem:[#allocation2 + $0x8] sm:$0x30] %v515_v30  ;;  %v535_v35 = vrot.slane %v527_v24, 6  ;;  %v563_v4 = vsel %vm423_vm0, %v527_v24, %v555_v15  ;;  %v583_v8 = vrot.slane %v575_v31, 2  ;;  %v611_v9 = vsel %vm423_vm0, %v575_v31, %v603_v12 }
 0x111   :  { %v432_v1 = vld [vmem:[#allocation2 + $0x20] sm:$0xc0]  ;;  %v480_v37 = vld [vmem:[#allocation2 + $0x20] sm:$0x30]  ;;  %v447_v10 = vsel %vm423_vm0, %v427_v5, %v439_v27  ;;  %v495_v11 = vsel %vm423_vm0, %v475_v6, %v487_v29  ;;  %567 = vst [vmem:[#allocation2 + $0x8] sm:$0xc] %v563_v4 }
 0x112   :  { %615 = vst [vmem:[#allocation2 + $0x8] sm:$0x3] %v611_v9  ;;  %v440_v22 = vrot.slane %v432_v1, 6  ;;  %v468_v23 = vsel %vm2462_vm1, %v432_v1, %v460_v18  ;;  %v528_v28 = vld [vmem:[#allocation2 + $0x20] sm:$0xc]  ;;  %v543_v12 = vsel %vm423_vm0, %v523_v7, %v535_v35  ;;  %v591_v24 = vsel %vm423_vm0, %v571_v13, %v583_v8 }
 0x113   :  { %v576_v15 = vld [vmem:[#allocation2 + $0x20] sm:$0x3]  ;;  %451 = vst [vmem:[#allocation2 + $0x30] sm:$0x3] %v447_v10  ;;  %499 = vst [vmem:[#allocation2 + $0x30] sm:$0xc] %v495_v11  ;;  %v516_v6 = vsel %vm2462_vm1, %v480_v37, %v508_v21 }
 0x114   :  { %472 = vst [vmem:[#allocation2 + $0x20] sm:$0xc0] %v468_v23  ;;  %v488_v5 = vrot.slane %v480_v37, 2  ;;  %v433_v27 = vld [vmem:[#allocation2 + $0x28] sm:$0xc0]  ;;  %v448_v1 = vsel %vm2462_vm1, %v428_v17, %v440_v22  ;;  %v536_v18 = vrot.slane %v528_v28, 6 }
 0x115   :  { %v477_v29 = vld [vmem:[#allocation2 + $0x18] sm:$0xc]  ;;  %547 = vst [vmem:[#allocation2 + $0x30] sm:$0x30] %v543_v12  ;;  %595 = vst [vmem:[#allocation2 + $0x30] sm:$0xc0] %v591_v24 }
 0x116   :  { %520 = vst [vmem:[#allocation2 + $0x20] sm:$0x30] %v516_v6  ;;  %v556_v30 = vrot.slane %v524_v25, 2  ;;  %v584_v31 = vrot.slane %v576_v15, 2  ;;  %v481_v7 = vld [vmem:[#allocation2 + $0x28] sm:$0x30]  ;;  %v496_v16 = vsel %vm2462_vm1, %v476_v19, %v488_v5  ;;  %v544_v21 = vsel %vm2462_vm1, %v524_v25, %v536_v18 }
 0x117   :  { %452 = vst [vmem:[#allocation2] sm:$0x3] %v448_v1  ;;  %v604_v13 = vrot.slane %v572_v32, 6  ;;  %v441_v35 = vrot.slane %v433_v27, 6  ;;  %v461_v4 = vrot.slane %v429_v34, 2  ;;  %v489_v9 = vrot.slane %v481_v7, 2 }
 0x118   :  { %v525_v37 = vld [vmem:[#allocation2 + $0x18] sm:$0x30]  ;;  %500 = vst [vmem:[#allocation2] sm:$0xc] %v496_v16  ;;  %v564_v17 = vsel %vm2462_vm1, %v528_v28, %v556_v30  ;;  %v592_v8 = vsel %vm2462_vm1, %v572_v32, %v584_v31  ;;  %v529_v10 = vld [vmem:[#allocation2 + $0x28] sm:$0xc] }
 0x119   :  { %v573_v11 = vld [vmem:[#allocation2 + $0x18] sm:$0xc0]  ;;  %548 = vst [vmem:[#allocation2] sm:$0x30] %v544_v21  ;;  %568 = vst [vmem:[#allocation2 + $0x20] sm:$0xc] %v564_v17  ;;  %v612_v19 = vsel %vm2462_vm1, %v576_v15, %v604_v13  ;;  %v449_v22 = vsel %vm2466_vm2, %v429_v34, %v441_v35  ;;  %v469_v25 = vsel %vm2466_vm2, %v433_v27, %v461_v4 }
 0x11a   :  { %596 = vst [vmem:[#allocation2] sm:$0xc0] %v592_v8  ;;  %v509_v23 = vrot.slane %v477_v29, 6  ;;  %v577_v28 = vld [vmem:[#allocation2 + $0x28] sm:$0x3]  ;;  %v497_v32 = vsel %vm2466_vm2, %v477_v29, %v489_v9  ;;  %v537_v24 = vrot.slane %v529_v10, 6 }
 0x11b   :  { %v430_v12 = vld [vmem:[#allocation2 + $0x10] sm:$0x3]  ;;  %616 = vst [vmem:[#allocation2 + $0x20] sm:$0x3] %v612_v19  ;;  %453 = vst [vmem:[#allocation2 + $0x18] sm:$0x3] %v449_v22 }
 0x11c   :  { %473 = vst [vmem:[#allocation2 + $0x28] sm:$0xc0] %v469_v25  ;;  %v557_v5 = vrot.slane %v525_v37, 2  ;;  %v585_v6 = vrot.slane %v577_v28, 2  ;;  %v434_v14 = vld [vmem:[#allocation2 + $0x38] sm:$0xc0]  ;;  %v517_v34 = vsel %vm2466_vm2, %v481_v7, %v509_v23  ;;  %v545_v30 = vsel %vm2466_vm2, %v525_v37, %v537_v24 }
 0x11d   :  { %501 = vst [vmem:[#allocation2 + $0x18] sm:$0xc] %v497_v32  ;;  %v605_v15 = vrot.slane %v573_v11, 6  ;;  %v442_v1 = vrot.slane %v434_v14, 6  ;;  %v462_v27 = vrot.slane %v430_v12, 2 }
 0x11e   :  { %v478_v18 = vld [vmem:[#allocation2 + $0x10] sm:$0xc]  ;;  %521 = vst [vmem:[#allocation2 + $0x28] sm:$0x30] %v517_v34  ;;  %v565_v31 = vsel %vm2466_vm2, %v529_v10, %v557_v5  ;;  %v593_v29 = vsel %vm2466_vm2, %v573_v11, %v585_v6  ;;  %v482_v16 = vld [vmem:[#allocation2 + $0x38] sm:$0x30] }
 0x11f   :  { %v510_v13 = vrot.slane %v478_v18, 6  ;;  %v526_v35 = vld [vmem:[#allocation2 + $0x10] sm:$0x30]  ;;  %549 = vst [vmem:[#allocation2 + $0x18] sm:$0x30] %v545_v30  ;;  %v613_v7 = vsel %vm2466_vm2, %v577_v28, %v605_v15  ;;  %v450_v4 = vsel %vm2470_vm3, %v430_v12, %v442_v1  ;;  %v470_v37 = vsel %vm2470_vm3, %v434_v14, %v462_v27 }
 0x120   :  { %569 = vst [vmem:[#allocation2 + $0x28] sm:$0xc] %v565_v31  ;;  %597 = vst [vmem:[#allocation2 + $0x18] sm:$0xc0] %v593_v29  ;;  %v490_v21 = vrot.slane %v482_v16, 2  ;;  %v558_v11 = vrot.slane %v526_v35, 2  ;;  %v849_v5 = vpop.f32.mrf.mxu0 }
 0x121   :  { %v530_v17 = vld [vmem:[#allocation2 + $0x38] sm:$0xc]  ;;  %v574_v8 = vld [vmem:[#allocation2 + $0x10] sm:$0xc0]  ;;  %617 = vst [vmem:[#allocation2 + $0x28] sm:$0x3] %v613_v7  ;;  %v518_v9 = vsel %vm2470_vm3, %v482_v16, %v510_v13 }
 0x122   :  { %454 = vst [vmem:[#allocation2 + $0x10] sm:$0x3] %v450_v4  ;;  %474 = vst [vmem:[#allocation2 + $0x38] sm:$0xc0] %v470_v37  ;;  %v538_v10 = vrot.slane %v530_v17, 6  ;;  %v606_v20 = vrot.slane %v574_v8, 6  ;;  %v498_v22 = vsel %vm2470_vm3, %v478_v18, %v490_v21  ;;  %v566_v28 = vsel %vm2470_vm3, %v530_v17, %v558_v11  ;;  %v851_v34 = vpop.f32.mrf.mxu0  ;;  %v890_v27 = vpop.f32.mrf.mxu1 }
 0x123   :  { %v578_v19 = vld [vmem:[#allocation2 + $0x38] sm:$0x3]  ;;  %522 = vst [vmem:[#allocation2 + $0x38] sm:$0x30] %v518_v9  ;;  %502 = vst [vmem:[#allocation2 + $0x10] sm:$0xc] %v498_v22 }
 0x124   :  { %v586_v25 = vrot.slane %v578_v19, 2  ;;  %v546_v23 = vsel %vm2470_vm3, %v526_v35, %v538_v10  ;;  %v614_v12 = vsel %vm2470_vm3, %v578_v19, %v606_v20  ;;  %570 = vst [vmem:[#allocation2 + $0x38] sm:$0xc] %v566_v28  ;;  %v651_v24 = vld [vmem:[#allocation2 + $0x30] sm:$0x3]  ;;  %v853_v18 = vpop.f32.mrf.mxu0  ;;  %v892_v31 = vpop.f32.mrf.mxu1 }
 0x125   :  { %550 = vst [vmem:[#allocation2 + $0x10] sm:$0x30] %v546_v23  ;;  %618 = vst [vmem:[#allocation2 + $0x38] sm:$0x3] %v614_v12  ;;  %v897_v6 = vadd.f32 %v849_v5, %v651_v24  ;;  %v652_v14 = vld [vmem:[#allocation2] sm:$0x3] }
 0x126   :  { %v594_v32 = vsel %vm2470_vm3, %v574_v8, %v586_v25  ;;  %v898_v1 = vadd.f32 %v851_v34, %v652_v14  ;;  %v854_v29 = vpop.f32.mrf.mxu0  ;;  %v894_v16 = vpop.f32.mrf.mxu1  ;;  %v653_v13 = vld [vmem:[#allocation2 + $0x18] sm:$0x3]  ;;  %v2853_v14 = vld [vmem:[#allocation10_spill] sm:$0xff] }
 0x127   :  { %598 = vst [vmem:[#allocation2 + $0x10] sm:$0xc0] %v594_v32  ;;  %v1931_v15 = vmul.f32 -1.442695, %v897_v6  ;;  %v899_v35 = vadd.f32 %v890_v27, %v653_v13  ;;  %v2852_v6 = vmov 0  }
 0x128   :  { %v1932_v30 = vmul.f32 -1.442695, %v898_v1  ;;  %v895_v26 = vpop.f32.mrf.mxu1  ;;  %v925_v27 = vld [vmem:[#allocation2 + $0x30] sm:$0xc]  ;;  %v926_v16 = vld [vmem:[#allocation2] sm:$0xc] }
 0x129   :  { %2059 = vpow2.f32 %v1931_v15  ;;  %v654_v7 = vld [vmem:[#allocation2 + $0x10] sm:$0x3]  ;;  %v1933_v4 = vmul.f32 -1.442695, %v899_v35 }
 0x12a   :  { %2061 = vpow2.f32 %v1932_v30  ;;  %v900_v21 = vadd.f32 %v892_v31, %v654_v7 }
 0x12b   :  { %2063 = vpow2.f32 %v1933_v4 }
 0x136   :  { %v2060_v37 = vpop.eup %2059 }
 0x137   :  { %v910_v17 = vadd.f32 1.0, %v2060_v37  ;;  %v2062_v8 = vpop.eup %2061 }
 0x138   :  { %v911_v9 = vadd.f32 1.0, %v2062_v8  ;;  %v2064_v10 = vpop.eup %2063  ;;  %v927_v8 = vld [vmem:[#allocation2 + $0x18] sm:$0xc] }
 0x139   :  { %2065 = vrcp.f32 %v910_v17  ;;  %v912_v22 = vadd.f32 1.0, %v2064_v10 }
 0x13a   :  { %2067 = vtanh.f32 %v900_v21 }
 0x13b   :  { %2069 = vrcp.f32 %v911_v9 }
 0x13c   :  { %2071 = vrcp.f32 %v912_v22 }
 0x146   :  { %v2066_v11 = vpop.eup %2065 }
 0x147   :  { %v2068_v19 = vpop.eup %2067 }
 0x148   :  { %v2070_v20 = vpop.eup %2069  ;;  %v921_v23 = vmul.f32 %v2068_v19, %v2066_v11  ;;  %v928_v19 = vld [vmem:[#allocation2 + $0x10] sm:$0xc] }
 0x149   :  { %v920_v25 = vmul.f32 0.0, %v2070_v20  ;;  %v2072_v12 = vpop.eup %2071 }
 0x14b   :  { %v2538_v28 = vadd.f32 %v921_v23, %v920_v25 }
 0x14d   :  { %2073 = vtanh.f32 %v2538_v28 }
 0x15a   :  { %v2074_v32 = vpop.eup %2073 }
 0x15b   :  { %v924_v24 = vmul.f32 %v2074_v32, %v2072_v12 }
 0x15d   :  { %v929_v5 = vpack.c.bf16 %v924_v24, %v924_v24 }
 0x15f   :  { %963 = vmatmul.mubr.bf16.vlgmr.msra.gmra.mxu0 %v929_v5  ;;  %1004 = vmatmul.mubr.bf16.vlgmr.msra.gmra.mxu1 %v929_v5 }
 0x160   :  { %1064 = vmatpush1.bf16.msra.mxu0 %v2319_v36  ;;  %1105 = vmatpush1.bf16.msra.mxu1 %v2328_v40 }
 0x161   :  { %1065 = vmatprep.subr.bf16.mxu0 %v2324_v38  ;;  %1106 = vmatprep.subr.bf16.mxu1 %v2332_v41 }
 0x162   :  { %1095 = vmatprep.mubr.bf16.mxu0 %v2852_v6  ;;  %1136 = vmatprep.mubr.bf16.mxu1 %v2852_v6 }
 0x164   :  { %1066 = vmatpush1.bf16.msra.mxu0 %v2326_v39  ;;  %1107 = vmatpush1.bf16.msra.mxu1 %v2339_v43 }
 0x165   :  { %1067 = vmatprep.subr.bf16.mxu0 %v2335_v42  ;;  %1108 = vmatprep.subr.bf16.mxu1 %v2346_v45 }
 0x168   :  { %1068 = vmatpush1.bf16.msra.mxu0 %v2344_v44  ;;  %1109 = vmatpush1.bf16.msra.mxu1 %v2352_v47 }
 0x169   :  { %1069 = vmatprep.subr.bf16.mxu0 %v2349_v46  ;;  %1110 = vmatprep.subr.bf16.mxu1 %v2358_v49 }
 0x16c   :  { %1070 = vmatpush1.bf16.msra.mxu0 %v2356_v48  ;;  %1111 = vmatpush1.bf16.msra.mxu1 %v2364_v51 }
 0x16d   :  { %1071 = vmatprep.subr.bf16.mxu0 %v2361_v50  ;;  %1112 = vmatprep.subr.bf16.mxu1 %v2370_v53 }
 0x170   :  { %1072 = vmatpush1.bf16.msra.mxu0 %v2368_v52  ;;  %1113 = vmatpush1.bf16.msra.mxu1 %v2376_v55 }
 0x171   :  { %1073 = vmatprep.subr.bf16.mxu0 %v2373_v54  ;;  %1114 = vmatprep.subr.bf16.mxu1 %v2382_v57 }
 0x174   :  { %1074 = vmatpush1.bf16.msra.mxu0 %v2380_v56  ;;  %1115 = vmatpush1.bf16.msra.mxu1 %v2388_v59 }
 0x175   :  { %1075 = vmatprep.subr.bf16.mxu0 %v2385_v58  ;;  %1116 = vmatprep.subr.bf16.mxu1 %v2394_v61 }
 0x178   :  { %1076 = vmatpush1.bf16.msra.mxu0 %v2392_v60  ;;  %1117 = vmatpush1.bf16.msra.mxu1 %v2400_v63 }
 0x179   :  { %1077 = vmatprep.subr.bf16.mxu0 %v2397_v62  ;;  %1118 = vmatprep.subr.bf16.mxu1 %v2406_v2 }
 0x17c   :  { %1078 = vmatpush1.bf16.msra.mxu0 %v2404_v0  ;;  %1119 = vmatpush1.bf16.msra.mxu1 %v2410_v3 }
 0x17d   :  { %1196 = vmatprep.subr.bf16.mxu0 %v2314_v33  ;;  %1237 = vmatprep.subr.bf16.mxu1 %v2853_v14 }
 0x21f   :  { %v964_v34 = vpop.f32.mrf.mxu0  ;;  %v1005_v15 = vpop.f32.mrf.mxu1 }
 0x220   :  { %v1016_v1 = vrot.slane %v964_v34, 6  ;;  %v1018_v17 = vrot.slane %v1005_v15, 6  ;;  %v1048_v34 = vrot.slane %v2538_v28, 6 }
 0x221   :  { %v966_v18 = vpop.f32.mrf.mxu0  ;;  %v1007_v30 = vpop.f32.mrf.mxu1 }
 0x222   :  { %v1024_v31 = vadd.f32 %v1016_v1, %v925_v27  ;;  %v1017_v29 = vrot.slane %v966_v18, 6  ;;  %v1026_v9 = vadd.f32 %v1018_v17, %v927_v8  ;;  %v1019_v10 = vrot.slane %v1007_v30, 6  ;;  %v1056_v17 = vld [vmem:[#allocation2] sm:$0x30] }
 0x223   :  { %v968_v13 = vpop.f32.mrf.mxu0  ;;  %v1009_v26 = vpop.f32.mrf.mxu1 }
 0x224   :  { %v1934_v35 = vmul.f32 -1.442695, %v1024_v31  ;;  %v1025_v7 = vadd.f32 %v1017_v29, %v926_v16  ;;  %v1936_v11 = vmul.f32 -1.442695, %v1026_v9  ;;  %v1027_v22 = vadd.f32 %v1019_v10, %v928_v19 }
 0x225   :  { %v969_v4 = vpop.f32.mrf.mxu0  ;;  %v1010_v37 = vpop.f32.mrf.mxu1 }
 0x226   :  { %2075 = vpow2.f32 %v1934_v35  ;;  %v1935_v21 = vmul.f32 -1.442695, %v1025_v7  ;;  %v1055_v35 = vld [vmem:[#allocation2 + $0x30] sm:$0x30] }
 0x228   :  { %2077 = vpow2.f32 %v1935_v21 }
 0x229   :  { %2079 = vpow2.f32 %v1936_v11 }
 0x233   :  { %v2076_v20 = vpop.eup %2075 }
 0x234   :  { %v1037_v25 = vadd.f32 1.0, %v2076_v20 }
 0x235   :  { %v2078_v23 = vpop.eup %2077 }
 0x236   :  { %2081 = vrcp.f32 %v1037_v25  ;;  %v1038_v12 = vadd.f32 1.0, %v2078_v23  ;;  %v2080_v32 = vpop.eup %2079 }
 0x237   :  { %2083 = vtanh.f32 %v1027_v22  ;;  %v1039_v1 = vadd.f32 1.0, %v2080_v32  ;;  %v1058_v32 = vld [vmem:[#allocation2 + $0x10] sm:$0x30] }
 0x238   :  { %2085 = vrcp.f32 %v1038_v12 }
 0x239   :  { %2087 = vrcp.f32 %v1039_v1 }
 0x243   :  { %v2082_v24 = vpop.eup %2081 }
 0x244   :  { %v2084_v5 = vpop.eup %2083 }
 0x245   :  { %v2086_v15 = vpop.eup %2085  ;;  %v1051_v18 = vmul.f32 %v2084_v5, %v2082_v24 }
 0x246   :  { %v1050_v27 = vmul.f32 %v2086_v15, %v1048_v34  ;;  %v2088_v31 = vpop.eup %2087 }
 0x248   :  { %v2576_v30 = vadd.f32 %v1051_v18, %v1050_v27 }
 0x24a   :  { %2089 = vtanh.f32 %v2576_v30 }
 0x257   :  { %v2090_v29 = vpop.eup %2089 }
 0x258   :  { %v1054_v16 = vmul.f32 %v2090_v29, %v2088_v31  ;;  %v1181_v29 = vrot.slane %v2576_v30, 6  ;;  %v2625_v30 = vld [vmem:[#allocation6 + $0xc0] ss:$16 sps:$4 sm:$0xff]  }
 0x25a   :  { %v1059_v13 = vpack.c.bf16 %v1054_v16, %v1054_v16 }
 0x25c   :  { %v1061_v26 = vrot.slane %v1059_v13, 1 }
 0x25e   :  { %1096 = vmatmul.mubr.bf16.vlgmr.msra.gmra.mxu0 %v1061_v26  ;;  %1137 = vmatmul.mubr.bf16.vlgmr.msra.gmra.mxu1 %v1061_v26 }
 0x25f   :  { %1197 = vmatpush1.bf16.msra.mxu0 %v2319_v36  ;;  %1238 = vmatpush1.bf16.msra.mxu1 %v2328_v40 }
 0x260   :  { %1198 = vmatprep.subr.bf16.mxu0 %v2324_v38  ;;  %1239 = vmatprep.subr.bf16.mxu1 %v2332_v41 }
 0x261   :  { %1228 = vmatprep.mubr.bf16.mxu0 %v2852_v6  ;;  %1269 = vmatprep.mubr.bf16.mxu1 %v2852_v6 }
 0x263   :  { %1199 = vmatpush1.bf16.msra.mxu0 %v2326_v39  ;;  %1240 = vmatpush1.bf16.msra.mxu1 %v2339_v43 }
 0x264   :  { %1200 = vmatprep.subr.bf16.mxu0 %v2335_v42  ;;  %1241 = vmatprep.subr.bf16.mxu1 %v2346_v45 }
 0x267   :  { %1201 = vmatpush1.bf16.msra.mxu0 %v2344_v44  ;;  %1242 = vmatpush1.bf16.msra.mxu1 %v2352_v47 }
 0x268   :  { %1202 = vmatprep.subr.bf16.mxu0 %v2349_v46  ;;  %1243 = vmatprep.subr.bf16.mxu1 %v2358_v49 }
 0x26b   :  { %1203 = vmatpush1.bf16.msra.mxu0 %v2356_v48  ;;  %1244 = vmatpush1.bf16.msra.mxu1 %v2364_v51 }
 0x26c   :  { %1204 = vmatprep.subr.bf16.mxu0 %v2361_v50  ;;  %1245 = vmatprep.subr.bf16.mxu1 %v2370_v53 }
 0x26f   :  { %1205 = vmatpush1.bf16.msra.mxu0 %v2368_v52  ;;  %1246 = vmatpush1.bf16.msra.mxu1 %v2376_v55 }
 0x270   :  { %1206 = vmatprep.subr.bf16.mxu0 %v2373_v54  ;;  %1247 = vmatprep.subr.bf16.mxu1 %v2382_v57 }
 0x273   :  { %1207 = vmatpush1.bf16.msra.mxu0 %v2380_v56  ;;  %1248 = vmatpush1.bf16.msra.mxu1 %v2388_v59 }
 0x274   :  { %1208 = vmatprep.subr.bf16.mxu0 %v2385_v58  ;;  %1249 = vmatprep.subr.bf16.mxu1 %v2394_v61 }
 0x277   :  { %1209 = vmatpush1.bf16.msra.mxu0 %v2392_v60  ;;  %1250 = vmatpush1.bf16.msra.mxu1 %v2400_v63 }
 0x278   :  { %1210 = vmatprep.subr.bf16.mxu0 %v2397_v62  ;;  %1251 = vmatprep.subr.bf16.mxu1 %v2406_v2 }
 0x27b   :  { %1211 = vmatpush1.bf16.msra.mxu0 %v2404_v0  ;;  %1252 = vmatpush1.bf16.msra.mxu1 %v2410_v3 }
 0x27c   :  { %1329 = vmatprep.subr.bf16.mxu0 %v2314_v33  ;;  %1370 = vmatprep.subr.bf16.mxu1 %v2853_v14  ;;  %v1057_v14 = vld [vmem:[#allocation2 + $0x18] sm:$0x30] }
 0x31e   :  { %v1097_v36 = vpop.f32.mrf.mxu0  ;;  %v1138_v39 = vpop.f32.mrf.mxu1 }
 0x31f   :  { %v1149_v28 = vrot.slane %v1097_v36, 4  ;;  %v1151_v33 = vrot.slane %v1138_v39, 4 }
 0x320   :  { %v1099_v7 = vpop.f32.mrf.mxu0  ;;  %v1140_v4 = vpop.f32.mrf.mxu1 }
 0x321   :  { %v1157_v37 = vadd.f32 %v1149_v28, %v1055_v35  ;;  %v1150_v21 = vrot.slane %v1099_v7, 4  ;;  %v1159_v25 = vadd.f32 %v1151_v33, %v1057_v14  ;;  %v1152_v23 = vrot.slane %v1140_v4, 4 }
 0x322   :  { %v1101_v8 = vpop.f32.mrf.mxu0  ;;  %v1142_v9 = vpop.f32.mrf.mxu1 }
 0x323   :  { %v1937_v10 = vmul.f32 -1.442695, %v1157_v37  ;;  %v1158_v11 = vadd.f32 %v1150_v21, %v1056_v17  ;;  %v1939_v12 = vmul.f32 -1.442695, %v1159_v25  ;;  %v1160_v5 = vadd.f32 %v1152_v23, %v1058_v32  ;;  %v2617_v21 = vld [vmem:[#allocation6 + $0xe0] ss:$16 sps:$4 sm:$0xff]  }
 0x324   :  { %v1102_v19 = vpop.f32.mrf.mxu0  ;;  %v1143_v20 = vpop.f32.mrf.mxu1 }
 0x325   :  { %2091 = vpow2.f32 %v1937_v10  ;;  %v1938_v22 = vmul.f32 -1.442695, %v1158_v11 }
 0x327   :  { %2093 = vpow2.f32 %v1938_v22 }
 0x328   :  { %2095 = vpow2.f32 %v1939_v12 }
 0x332   :  { %v2092_v24 = vpop.eup %2091 }
 0x333   :  { %v1170_v34 = vadd.f32 1.0, %v2092_v24 }
 0x334   :  { %v2094_v15 = vpop.eup %2093 }
 0x335   :  { %2097 = vrcp.f32 %v1170_v34  ;;  %v1171_v1 = vadd.f32 1.0, %v2094_v15  ;;  %v2096_v27 = vpop.eup %2095  ;;  %v2667_v34 = vld [vmem:[#allocation6 + $0xc4] ss:$16 sps:$4 sm:$0xff]   ;;  %v2670_v15 = vld [vmem:[#allocation6 + $0xcc] ss:$16 sps:$4 sm:$0xff]  }
 0x336   :  { %2099 = vtanh.f32 %v1160_v5  ;;  %v1172_v13 = vadd.f32 1.0, %v2096_v27  ;;  %v2664_v5 = vld [vmem:[#allocation6 + $0xe8] ss:$16 sps:$4 sm:$0xff]   ;;  %v2679_v27 = vld [vmem:[#allocation6 + $0xa4] ss:$16 sps:$4 sm:$0xff]  }
 0x337   :  { %2101 = vrcp.f32 %v1171_v1  ;;  %v2676_v1 = vld [vmem:[#allocation6 + $0xc8] ss:$16 sps:$4 sm:$0xff]  }
 0x338   :  { %2103 = vrcp.f32 %v1172_v13  ;;  %v2694_v13 = vld [vmem:[#allocation6 + $0x8c] ss:$16 sps:$4 sm:$0xff]  }
 0x342   :  { %v2098_v18 = vpop.eup %2097 }
 0x343   :  { %v2100_v31 = vpop.eup %2099 }
 0x344   :  { %v2102_v16 = vpop.eup %2101  ;;  %v1184_v36 = vmul.f32 %v2100_v31, %v2098_v18  ;;  %v2682_v18 = vld [vmem:[#allocation6 + $0xac] ss:$16 sps:$4 sm:$0xff]   ;;  %v2685_v31 = vld [vmem:[#allocation6 + $0xa0] ss:$16 sps:$4 sm:$0xff]  }
 0x345   :  { %v1183_v26 = vmul.f32 %v2102_v16, %v1181_v29  ;;  %v2104_v28 = vpop.eup %2103  ;;  %v2688_v29 = vld [vmem:[#allocation6 + $0xa8] ss:$16 sps:$4 sm:$0xff]   ;;  %v2691_v16 = vld [vmem:[#allocation6 + $0x84] ss:$16 sps:$4 sm:$0xff]  }
 0x347   :  { %v2614_v39 = vadd.f32 %v1184_v36, %v1183_v26  ;;  %v2697_v26 = vld [vmem:[#allocation6 + $0x80] ss:$16 sps:$4 sm:$0xff]   ;;  %v2700_v36 = vld [vmem:[#allocation6 + $0x88] ss:$16 sps:$4 sm:$0xff]  }
 0x349   :  { %2105 = vtanh.f32 %v2614_v39  ;;  %v1314_v11 = vrot.slane %v2614_v39, 6  ;;  %v2703_v39 = vld [vmem:[#allocation6 + $0x64] ss:$16 sps:$4 sm:$0xff]  }
 0x356   :  { %v2106_v35 = vpop.eup %2105 }
 0x357   :  { %v1187_v7 = vmul.f32 %v2106_v35, %v2104_v28  ;;  %v2706_v28 = vld [vmem:[#allocation6 + $0x6c] ss:$16 sps:$4 sm:$0xff]   ;;  %v2709_v35 = vld [vmem:[#allocation6 + $0x60] ss:$16 sps:$4 sm:$0xff]  }
 0x359   :  { %v1192_v4 = vpack.c.bf16 %v1187_v7, %v1187_v7  ;;  %v2712_v7 = vld [vmem:[#allocation6 + $0x68] ss:$16 sps:$4 sm:$0xff]  }
 0x35b   :  { %v1194_v37 = vrot.slane %v1192_v4, 2  ;;  %v2715_v4 = vld [vmem:[#allocation6 + $0x44] ss:$16 sps:$4 sm:$0xff]  }
 0x35d   :  { %1229 = vmatmul.mubr.bf16.vlgmr.msra.gmra.mxu0 %v1194_v37  ;;  %1270 = vmatmul.mubr.bf16.vlgmr.msra.gmra.mxu1 %v1194_v37  ;;  %v2718_v37 = vld [vmem:[#allocation6 + $0x4c] ss:$16 sps:$4 sm:$0xff]  }
 0x35e   :  { %1330 = vmatpush1.bf16.msra.mxu0 %v2617_v21  ;;  %1371 = vmatpush1.bf16.msra.mxu1 %v2328_v40  ;;  %v2656_v40 = vld [vmem:[#allocation6 + $0xec] ss:$16 sps:$4 sm:$0xff]  }
 0x35f   :  { %1331 = vmatprep.subr.bf16.mxu0 %v2324_v38  ;;  %1372 = vmatprep.subr.bf16.mxu1 %v2332_v41  ;;  %v2653_v38 = vld [vmem:[#allocation6 + $0xe4] ss:$16 sps:$4 sm:$0xff]  }
 0x360   :  { %1361 = vmatprep.mubr.bf16.mxu0 %v2852_v6  ;;  %1402 = vmatprep.mubr.bf16.mxu1 %v2852_v6 }
 0x362   :  { %1332 = vmatpush1.bf16.msra.mxu0 %v2625_v30  ;;  %1373 = vmatpush1.bf16.msra.mxu1 %v2339_v43 }
 0x363   :  { %1333 = vmatprep.subr.bf16.mxu0 %v2335_v42  ;;  %1374 = vmatprep.subr.bf16.mxu1 %v2346_v45 }
 0x366   :  { %1334 = vmatpush1.bf16.msra.mxu0 %v2344_v44  ;;  %1375 = vmatpush1.bf16.msra.mxu1 %v2352_v47  ;;  %v1188_v44 = vld [vmem:[#allocation2 + $0x30] sm:$0xc0] }
 0x367   :  { %1335 = vmatprep.subr.bf16.mxu0 %v2349_v46  ;;  %1376 = vmatprep.subr.bf16.mxu1 %v2358_v49  ;;  %v1189_v49 = vld [vmem:[#allocation2] sm:$0xc0] }
 0x36a   :  { %1336 = vmatpush1.bf16.msra.mxu0 %v2356_v48  ;;  %1377 = vmatpush1.bf16.msra.mxu1 %v2364_v51 }
 0x36b   :  { %1337 = vmatprep.subr.bf16.mxu0 %v2361_v50  ;;  %1378 = vmatprep.subr.bf16.mxu1 %v2370_v53 }
 0x36e   :  { %1338 = vmatpush1.bf16.msra.mxu0 %v2368_v52  ;;  %1379 = vmatpush1.bf16.msra.mxu1 %v2376_v55 }
 0x36f   :  { %1339 = vmatprep.subr.bf16.mxu0 %v2373_v54  ;;  %1380 = vmatprep.subr.bf16.mxu1 %v2382_v57 }
 0x372   :  { %1340 = vmatpush1.bf16.msra.mxu0 %v2380_v56  ;;  %1381 = vmatpush1.bf16.msra.mxu1 %v2388_v59 }
 0x373   :  { %1341 = vmatprep.subr.bf16.mxu0 %v2385_v58  ;;  %1382 = vmatprep.subr.bf16.mxu1 %v2394_v61  ;;  %v1190_v58 = vld [vmem:[#allocation2 + $0x18] sm:$0xc0] }
 0x376   :  { %1342 = vmatpush1.bf16.msra.mxu0 %v2392_v60  ;;  %1383 = vmatpush1.bf16.msra.mxu1 %v2400_v63 }
 0x377   :  { %1343 = vmatprep.subr.bf16.mxu0 %v2397_v62  ;;  %1384 = vmatprep.subr.bf16.mxu1 %v2406_v2  ;;  %v1191_v62 = vld [vmem:[#allocation2 + $0x10] sm:$0xc0] }
 0x37a   :  { %1344 = vmatpush1.bf16.msra.mxu0 %v2404_v0  ;;  %1385 = vmatpush1.bf16.msra.mxu1 %v2410_v3 }
 0x37b   :  { %1447 = vmatprep.subr.bf16.mxu0 %v2653_v38  ;;  %1488 = vmatprep.subr.bf16.mxu1 %v2656_v40 }
 0x41d   :  { %v1230_v41 = vpop.f32.mrf.mxu0  ;;  %v1271_v42 = vpop.f32.mrf.mxu1 }
 0x41e   :  { %v1282_v43 = vrot.slane %v1230_v41, 2  ;;  %v1284_v57 = vrot.slane %v1271_v42, 2  ;;  %v2721_v41 = vld [vmem:[#allocation6 + $0x40] ss:$16 sps:$4 sm:$0xff]   ;;  %v2724_v42 = vld [vmem:[#allocation6 + $0x48] ss:$16 sps:$4 sm:$0xff]  }
 0x41f   :  { %v1232_v45 = vpop.f32.mrf.mxu0  ;;  %v1273_v46 = vpop.f32.mrf.mxu1 }
 0x420   :  { %v1290_v47 = vadd.f32 %v1282_v43, %v1188_v44  ;;  %v1283_v48 = vrot.slane %v1232_v45, 2  ;;  %v1292_v59 = vadd.f32 %v1284_v57, %v1190_v58  ;;  %v1285_v60 = vrot.slane %v1273_v46, 2  ;;  %v2727_v43 = vld [vmem:[#allocation6 + $0x24] ss:$16 sps:$4 sm:$0xff]   ;;  %v2730_v44 = vld [vmem:[#allocation6 + $0x2c] ss:$16 sps:$4 sm:$0xff]  }
 0x421   :  { %v1234_v50 = vpop.f32.mrf.mxu0  ;;  %v1275_v51 = vpop.f32.mrf.mxu1  ;;  %v2733_v45 = vld [vmem:[#allocation6 + $0x20] ss:$16 sps:$4 sm:$0xff]   ;;  %v2736_v46 = vld [vmem:[#allocation6 + $0x28] ss:$16 sps:$4 sm:$0xff]  }
 0x422   :  { %v1940_v52 = vmul.f32 -1.442695, %v1290_v47  ;;  %v1291_v53 = vadd.f32 %v1283_v48, %v1189_v49  ;;  %v1942_v61 = vmul.f32 -1.442695, %v1292_v59  ;;  %v1293_v0 = vadd.f32 %v1285_v60, %v1191_v62  ;;  %v2739_v47 = vld [vmem:[#allocation6 + $0x4] ss:$16 sps:$4 sm:$0xff]  }
 0x423   :  { %v1235_v54 = vpop.f32.mrf.mxu0  ;;  %v1276_v55 = vpop.f32.mrf.mxu1  ;;  %v2742_v48 = vld [vmem:[#allocation6 + $0xc] ss:$16 sps:$4 sm:$0xff]   ;;  %v2745_v49 = vld [vmem:[#allocation6] ss:$16 sps:$4 sm:$0xff]   ;;  %v2748_v50 = vld [vmem:[#allocation6 + $0x8] ss:$16 sps:$4 sm:$0xff]  }
 0x424   :  { %2107 = vpow2.f32 %v1940_v52  ;;  %v1941_v56 = vmul.f32 -1.442695, %v1291_v53  ;;  %v1321_v51 = vld [vmem:[#allocation2 + $0x8] sm:$0x3]  ;;  %v1322_v55 = vld [vmem:[#allocation2 + $0x20] sm:$0x3] }
 0x426   :  { %2109 = vpow2.f32 %v1941_v56 }
 0x427   :  { %2111 = vpow2.f32 %v1942_v61 }
 0x431   :  { %v2108_v63 = vpop.eup %2107 }
 0x432   :  { %v1303_v2 = vadd.f32 1.0, %v2108_v63 }
 0x433   :  { %v2110_v3 = vpop.eup %2109 }
 0x434   :  { %2113 = vrcp.f32 %v1303_v2  ;;  %v1304_v17 = vadd.f32 1.0, %v2110_v3  ;;  %v2112_v8 = vpop.eup %2111  ;;  %v1323_v2 = vld [vmem:[#allocation2 + $0x28] sm:$0x3] }
 0x435   :  { %2115 = vtanh.f32 %v1293_v0  ;;  %v1305_v20 = vadd.f32 1.0, %v2112_v8  ;;  %v1324_v8 = vld [vmem:[#allocation2 + $0x38] sm:$0x3] }
 0x436   :  { %2117 = vrcp.f32 %v1304_v17 }
 0x437   :  { %2119 = vrcp.f32 %v1305_v20 }
 0x441   :  { %v2114_v9 = vpop.eup %2113 }
 0x442   :  { %v2116_v10 = vpop.eup %2115 }
 0x443   :  { %v2118_v19 = vpop.eup %2117  ;;  %v1317_v33 = vmul.f32 %v2116_v10, %v2114_v9 }
 0x444   :  { %v1316_v22 = vmul.f32 %v2118_v19, %v1314_v11  ;;  %v2120_v25 = vpop.eup %2119 }
 0x446   :  { %v2660_v14 = vadd.f32 %v1317_v33, %v1316_v22 }
 0x448   :  { %2121 = vtanh.f32 %v2660_v14 }
 0x455   :  { %v2122_v23 = vpop.eup %2121 }
 0x456   :  { %v1320_v12 = vmul.f32 %v2122_v23, %v2120_v25  ;;  %v1435_v23 = vrot.slane %v2660_v14, 6 }
 0x458   :  { %v1325_v32 = vpack.c.bf16 %v1320_v12, %v1320_v12 }
 0x45a   :  { %v1327_v24 = vrot.slane %v1325_v32, 3 }
 0x45c   :  { %1362 = vmatmul.mubr.bf16.vlgmr.msra.gmra.mxu0 %v1327_v24  ;;  %1403 = vmatmul.mubr.bf16.vlgmr.msra.gmra.mxu1 %v1327_v24 }
 0x45d   :  { %1448 = vmatpush1.bf16.msra.mxu0 %v2617_v21  ;;  %1489 = vmatpush1.bf16.msra.mxu1 %v2664_v5 }
 0x45e   :  { %1449 = vmatprep.subr.bf16.mxu0 %v2667_v34  ;;  %1490 = vmatprep.subr.bf16.mxu1 %v2670_v15 }
 0x45f   :  { %1479 = vmatprep.mubr.bf16.mxu0 %v2852_v6  ;;  %1520 = vmatprep.mubr.bf16.mxu1 %v2852_v6 }
 0x461   :  { %1450 = vmatpush1.bf16.msra.mxu0 %v2625_v30  ;;  %1491 = vmatpush1.bf16.msra.mxu1 %v2676_v1 }
 0x462   :  { %1451 = vmatprep.subr.bf16.mxu0 %v2679_v27  ;;  %1492 = vmatprep.subr.bf16.mxu1 %v2682_v18 }
 0x465   :  { %1452 = vmatpush1.bf16.msra.mxu0 %v2685_v31  ;;  %1493 = vmatpush1.bf16.msra.mxu1 %v2688_v29 }
 0x466   :  { %1453 = vmatprep.subr.bf16.mxu0 %v2691_v16  ;;  %1494 = vmatprep.subr.bf16.mxu1 %v2694_v13 }
 0x469   :  { %1454 = vmatpush1.bf16.msra.mxu0 %v2697_v26  ;;  %1495 = vmatpush1.bf16.msra.mxu1 %v2700_v36 }
 0x46a   :  { %1455 = vmatprep.subr.bf16.mxu0 %v2703_v39  ;;  %1496 = vmatprep.subr.bf16.mxu1 %v2706_v28 }
 0x46d   :  { %1456 = vmatpush1.bf16.msra.mxu0 %v2709_v35  ;;  %1497 = vmatpush1.bf16.msra.mxu1 %v2712_v7 }
 0x46e   :  { %1457 = vmatprep.subr.bf16.mxu0 %v2715_v4  ;;  %1498 = vmatprep.subr.bf16.mxu1 %v2718_v37 }
 0x471   :  { %1458 = vmatpush1.bf16.msra.mxu0 %v2721_v41  ;;  %1499 = vmatpush1.bf16.msra.mxu1 %v2724_v42 }
 0x472   :  { %1459 = vmatprep.subr.bf16.mxu0 %v2727_v43  ;;  %1500 = vmatprep.subr.bf16.mxu1 %v2730_v44 }
 0x475   :  { %1460 = vmatpush1.bf16.msra.mxu0 %v2733_v45  ;;  %1501 = vmatpush1.bf16.msra.mxu1 %v2736_v46 }
 0x476   :  { %1461 = vmatprep.subr.bf16.mxu0 %v2739_v47  ;;  %1502 = vmatprep.subr.bf16.mxu1 %v2742_v48 }
 0x479   :  { %1462 = vmatpush1.bf16.msra.mxu0 %v2745_v49  ;;  %1503 = vmatpush1.bf16.msra.mxu1 %v2748_v50 }
 0x47a   :  { %1580 = vmatprep.subr.bf16.mxu0 %v2653_v38  ;;  %1621 = vmatprep.subr.bf16.mxu1 %v2656_v40 }
 0x51c   :  { %v1363_v52 = vpop.f32.mrf.mxu0  ;;  %v1404_v53 = vpop.f32.mrf.mxu1 }
 0x51d   :  { %v1411_v54 = vadd.f32 %v1363_v52, %v1321_v51  ;;  %v1413_v3 = vadd.f32 %v1404_v53, %v1323_v2 }
 0x51e   :  { %v1365_v56 = vpop.f32.mrf.mxu0  ;;  %v1406_v57 = vpop.f32.mrf.mxu1 }
 0x51f   :  { %v1943_v58 = vmul.f32 -1.442695, %v1411_v54  ;;  %v1412_v59 = vadd.f32 %v1365_v56, %v1322_v55  ;;  %v1945_v17 = vmul.f32 -1.442695, %v1413_v3  ;;  %v1414_v10 = vadd.f32 %v1406_v57, %v1324_v8 }
 0x520   :  { %v1367_v60 = vpop.f32.mrf.mxu0  ;;  %v1408_v61 = vpop.f32.mrf.mxu1 }
 0x521   :  { %2123 = vpow2.f32 %v1943_v58  ;;  %v1944_v62 = vmul.f32 -1.442695, %v1412_v59  ;;  %v1442_v59 = vld [vmem:[#allocation2 + $0x8] sm:$0xc] }
 0x522   :  { %v1368_v63 = vpop.f32.mrf.mxu0  ;;  %v1409_v0 = vpop.f32.mrf.mxu1 }
 0x523   :  { %2125 = vpow2.f32 %v1944_v62  ;;  %v1443_v0 = vld [vmem:[#allocation2 + $0x20] sm:$0xc] }
 0x524   :  { %2127 = vpow2.f32 %v1945_v17 }
 0x52e   :  { %v2124_v9 = vpop.eup %2123 }
 0x52f   :  { %v1424_v11 = vadd.f32 1.0, %v2124_v9 }
 0x530   :  { %v2126_v19 = vpop.eup %2125 }
 0x531   :  { %2129 = vrcp.f32 %v1424_v11  ;;  %v1425_v20 = vadd.f32 1.0, %v2126_v19  ;;  %v2128_v22 = vpop.eup %2127 }
 0x532   :  { %2131 = vtanh.f32 %v1414_v10  ;;  %v1426_v32 = vadd.f32 1.0, %v2128_v22 }
 0x533   :  { %2133 = vrcp.f32 %v1425_v20 }
 0x534   :  { %2135 = vrcp.f32 %v1426_v32 }
 0x53e   :  { %v2130_v33 = vpop.eup %2129 }
 0x53f   :  { %v2132_v25 = vpop.eup %2131 }
 0x540   :  { %v2134_v12 = vpop.eup %2133  ;;  %v1438_v51 = vmul.f32 %v2132_v25, %v2130_v33  ;;  %v1445_v33 = vld [vmem:[#allocation2 + $0x38] sm:$0xc] }
 0x541   :  { %v1437_v24 = vmul.f32 %v2134_v12, %v1435_v23  ;;  %v2136_v53 = vpop.eup %2135 }
 0x543   :  { %v2754_v52 = vadd.f32 %v1438_v51, %v1437_v24 }
 0x545   :  { %2137 = vtanh.f32 %v2754_v52 }
 0x552   :  { %v2138_v54 = vpop.eup %2137 }
 0x553   :  { %v1441_v55 = vmul.f32 %v2138_v54, %v2136_v53 }
 0x555   :  { %v1446_v56 = vpack.c.bf16 %v1441_v55, %v1441_v55  ;;  %v1565_v55 = vrot.slane %v2754_v52, 6 }
 0x557   :  { %1480 = vmatmul.mubr.bf16.vlgmr.msra.gmra.mxu0 %v1446_v56  ;;  %1521 = vmatmul.mubr.bf16.vlgmr.msra.gmra.mxu1 %v1446_v56 }
 0x558   :  { %1581 = vmatpush1.bf16.msra.mxu0 %v2617_v21  ;;  %1622 = vmatpush1.bf16.msra.mxu1 %v2664_v5 }
 0x559   :  { %1582 = vmatprep.subr.bf16.mxu0 %v2667_v34  ;;  %1623 = vmatprep.subr.bf16.mxu1 %v2670_v15 }
 0x55a   :  { %1612 = vmatprep.mubr.bf16.mxu0 %v2852_v6  ;;  %1653 = vmatprep.mubr.bf16.mxu1 %v2852_v6 }
 0x55c   :  { %1583 = vmatpush1.bf16.msra.mxu0 %v2625_v30  ;;  %1624 = vmatpush1.bf16.msra.mxu1 %v2676_v1 }
 0x55d   :  { %1584 = vmatprep.subr.bf16.mxu0 %v2679_v27  ;;  %1625 = vmatprep.subr.bf16.mxu1 %v2682_v18 }
 0x560   :  { %1585 = vmatpush1.bf16.msra.mxu0 %v2685_v31  ;;  %1626 = vmatpush1.bf16.msra.mxu1 %v2688_v29 }
 0x561   :  { %1586 = vmatprep.subr.bf16.mxu0 %v2691_v16  ;;  %1627 = vmatprep.subr.bf16.mxu1 %v2694_v13 }
 0x564   :  { %1587 = vmatpush1.bf16.msra.mxu0 %v2697_v26  ;;  %1628 = vmatpush1.bf16.msra.mxu1 %v2700_v36 }
 0x565   :  { %1588 = vmatprep.subr.bf16.mxu0 %v2703_v39  ;;  %1629 = vmatprep.subr.bf16.mxu1 %v2706_v28 }
 0x568   :  { %1589 = vmatpush1.bf16.msra.mxu0 %v2709_v35  ;;  %1630 = vmatpush1.bf16.msra.mxu1 %v2712_v7 }
 0x569   :  { %1590 = vmatprep.subr.bf16.mxu0 %v2715_v4  ;;  %1631 = vmatprep.subr.bf16.mxu1 %v2718_v37 }
 0x56c   :  { %1591 = vmatpush1.bf16.msra.mxu0 %v2721_v41  ;;  %1632 = vmatpush1.bf16.msra.mxu1 %v2724_v42 }
 0x56d   :  { %1592 = vmatprep.subr.bf16.mxu0 %v2727_v43  ;;  %1633 = vmatprep.subr.bf16.mxu1 %v2730_v44 }
 0x570   :  { %1593 = vmatpush1.bf16.msra.mxu0 %v2733_v45  ;;  %1634 = vmatpush1.bf16.msra.mxu1 %v2736_v46 }
 0x571   :  { %1594 = vmatprep.subr.bf16.mxu0 %v2739_v47  ;;  %1635 = vmatprep.subr.bf16.mxu1 %v2742_v48 }
 0x574   :  { %1595 = vmatpush1.bf16.msra.mxu0 %v2745_v49  ;;  %1636 = vmatpush1.bf16.msra.mxu1 %v2748_v50 }
 0x575   :  { %1713 = vmatprep.subr.bf16.mxu0 %v2653_v38  ;;  %1754 = vmatprep.subr.bf16.mxu1 %v2656_v40  ;;  %v1444_v40 = vld [vmem:[#allocation2 + $0x28] sm:$0xc] }
 0x617   :  { %v1481_v14 = vpop.f32.mrf.mxu0  ;;  %v1522_v57 = vpop.f32.mrf.mxu1 }
 0x618   :  { %v1533_v58 = vrot.slane %v1481_v14, 6  ;;  %v1535_v38 = vrot.slane %v1522_v57, 6 }
 0x619   :  { %v1483_v60 = vpop.f32.mrf.mxu0  ;;  %v1524_v61 = vpop.f32.mrf.mxu1 }
 0x61a   :  { %v1541_v62 = vadd.f32 %v1533_v58, %v1442_v59  ;;  %v1534_v63 = vrot.slane %v1483_v60, 6  ;;  %v1543_v19 = vadd.f32 %v1535_v38, %v1444_v40  ;;  %v1536_v20 = vrot.slane %v1524_v61, 6 }
 0x61b   :  { %v1485_v2 = vpop.f32.mrf.mxu0  ;;  %v1526_v3 = vpop.f32.mrf.mxu1 }
 0x61c   :  { %v1946_v17 = vmul.f32 -1.442695, %v1541_v62  ;;  %v1542_v8 = vadd.f32 %v1534_v63, %v1443_v0  ;;  %v1948_v22 = vmul.f32 -1.442695, %v1543_v19  ;;  %v1544_v23 = vadd.f32 %v1536_v20, %v1445_v33  ;;  %v1705_v33 = vld [vmem:[#allocation2 + $0x8] sm:$0xc0] }
 0x61d   :  { %v1486_v9 = vpop.f32.mrf.mxu0  ;;  %v1527_v10 = vpop.f32.mrf.mxu1 }
 0x61e   :  { %2139 = vpow2.f32 %v1946_v17  ;;  %v1947_v11 = vmul.f32 -1.442695, %v1542_v8 }
 0x620   :  { %2141 = vpow2.f32 %v1947_v11 }
 0x621   :  { %2143 = vpow2.f32 %v1948_v22 }
 0x62b   :  { %v2140_v25 = vpop.eup %2139 }
 0x62c   :  { %v1554_v12 = vadd.f32 1.0, %v2140_v25 }
 0x62d   :  { %v2142_v32 = vpop.eup %2141 }
 0x62e   :  { %2145 = vrcp.f32 %v1554_v12  ;;  %v1555_v24 = vadd.f32 1.0, %v2142_v32  ;;  %v2144_v51 = vpop.eup %2143 }
 0x62f   :  { %2147 = vtanh.f32 %v1544_v23  ;;  %v1556_v14 = vadd.f32 1.0, %v2144_v51 }
 0x630   :  { %2149 = vrcp.f32 %v1555_v24  ;;  %v1706_v24 = vld [vmem:[#allocation2 + $0x20] sm:$0xc0] }
 0x631   :  { %2151 = vrcp.f32 %v1556_v14 }
 0x63b   :  { %v2146_v53 = vpop.eup %2145 }
 0x63c   :  { %v2148_v54 = vpop.eup %2147 }
 0x63d   :  { %v2150_v56 = vpop.eup %2149  ;;  %v1568_v58 = vmul.f32 %v2148_v54, %v2146_v53 }
 0x63e   :  { %v1567_v57 = vmul.f32 %v2150_v56, %v1565_v55  ;;  %v2152_v60 = vpop.eup %2151 }
 0x640   :  { %v2792_v59 = vadd.f32 %v1568_v58, %v1567_v57 }
 0x642   :  { %2153 = vtanh.f32 %v2792_v59 }
 0x64f   :  { %v2154_v61 = vpop.eup %2153 }
 0x650   :  { %v1571_v62 = vmul.f32 %v2154_v61, %v2152_v60 }
 0x652   :  { %v1576_v63 = vpack.c.bf16 %v1571_v62, %v1571_v62 }
 0x654   :  { %v1578_v0 = vrot.slane %v1576_v63, 1  ;;  %v1708_v63 = vld [vmem:[#allocation2 + $0x38] sm:$0xc0] }
 0x656   :  { %1613 = vmatmul.mubr.bf16.vlgmr.msra.gmra.mxu0 %v1578_v0  ;;  %1654 = vmatmul.mubr.bf16.vlgmr.msra.gmra.mxu1 %v1578_v0 }
 0x657   :  { %1714 = vmatpush1.bf16.msra.mxu0 %v2617_v21  ;;  %1755 = vmatpush1.bf16.msra.mxu1 %v2664_v5  ;;  %v1572_v5 = vld [vmem:[#allocation2 + $0x8] sm:$0x30] }
 0x658   :  { %1715 = vmatprep.subr.bf16.mxu0 %v2667_v34  ;;  %1756 = vmatprep.subr.bf16.mxu1 %v2670_v15 }
 0x659   :  { %1745 = vmatprep.mubr.bf16.mxu0 %v2852_v6  ;;  %1786 = vmatprep.mubr.bf16.mxu1 %v2852_v6 }
 0x65b   :  { %1716 = vmatpush1.bf16.msra.mxu0 %v2625_v30  ;;  %1757 = vmatpush1.bf16.msra.mxu1 %v2676_v1 }
 0x65c   :  { %1717 = vmatprep.subr.bf16.mxu0 %v2679_v27  ;;  %1758 = vmatprep.subr.bf16.mxu1 %v2682_v18  ;;  %v1573_v18 = vld [vmem:[#allocation2 + $0x20] sm:$0x30] }
 0x65f   :  { %1718 = vmatpush1.bf16.msra.mxu0 %v2685_v31  ;;  %1759 = vmatpush1.bf16.msra.mxu1 %v2688_v29 }
 0x660   :  { %1719 = vmatprep.subr.bf16.mxu0 %v2691_v16  ;;  %1760 = vmatprep.subr.bf16.mxu1 %v2694_v13 }
 0x663   :  { %1720 = vmatpush1.bf16.msra.mxu0 %v2697_v26  ;;  %1761 = vmatpush1.bf16.msra.mxu1 %v2700_v36 }
 0x664   :  { %1721 = vmatprep.subr.bf16.mxu0 %v2703_v39  ;;  %1762 = vmatprep.subr.bf16.mxu1 %v2706_v28 }
 0x667   :  { %1722 = vmatpush1.bf16.msra.mxu0 %v2709_v35  ;;  %1763 = vmatpush1.bf16.msra.mxu1 %v2712_v7  ;;  %v1574_v35 = vld [vmem:[#allocation2 + $0x28] sm:$0x30] }
 0x668   :  { %1723 = vmatprep.subr.bf16.mxu0 %v2715_v4  ;;  %1764 = vmatprep.subr.bf16.mxu1 %v2718_v37 }
 0x66b   :  { %1724 = vmatpush1.bf16.msra.mxu0 %v2721_v41  ;;  %1765 = vmatpush1.bf16.msra.mxu1 %v2724_v42  ;;  %v1575_v41 = vld [vmem:[#allocation2 + $0x38] sm:$0x30] }
 0x66c   :  { %1725 = vmatprep.subr.bf16.mxu0 %v2727_v43  ;;  %1766 = vmatprep.subr.bf16.mxu1 %v2730_v44 }
 0x66f   :  { %1726 = vmatpush1.bf16.msra.mxu0 %v2733_v45  ;;  %1767 = vmatpush1.bf16.msra.mxu1 %v2736_v46 }
 0x670   :  { %1727 = vmatprep.subr.bf16.mxu0 %v2739_v47  ;;  %1768 = vmatprep.subr.bf16.mxu1 %v2742_v48 }
 0x673   :  { %1728 = vmatpush1.bf16.msra.mxu0 %v2745_v49  ;;  %1769 = vmatpush1.bf16.msra.mxu1 %v2748_v50  ;;  %v1698_v50 = vrot.slane %v2792_v59, 6  ;;  %v1707_v59 = vld [vmem:[#allocation2 + $0x28] sm:$0xc0] }
 0x716   :  { %v1614_v6 = vpop.f32.mrf.mxu0  ;;  %v1655_v21 = vpop.f32.mrf.mxu1 }
 0x717   :  { %v1666_v30 = vrot.slane %v1614_v6, 4  ;;  %v1668_v28 = vrot.slane %v1655_v21, 4 }
 0x718   :  { %v1616_v34 = vpop.f32.mrf.mxu0  ;;  %v1657_v15 = vpop.f32.mrf.mxu1 }
 0x719   :  { %v1674_v1 = vadd.f32 %v1666_v30, %v1572_v5  ;;  %v1667_v27 = vrot.slane %v1616_v34, 4  ;;  %v1676_v7 = vadd.f32 %v1668_v28, %v1574_v35  ;;  %v1669_v4 = vrot.slane %v1657_v15, 4 }
 0x71a   :  { %v1618_v31 = vpop.f32.mrf.mxu0  ;;  %v1659_v29 = vpop.f32.mrf.mxu1 }
 0x71b   :  { %v1949_v16 = vmul.f32 -1.442695, %v1674_v1  ;;  %v1675_v13 = vadd.f32 %v1667_v27, %v1573_v18  ;;  %v1951_v37 = vmul.f32 -1.442695, %v1676_v7  ;;  %v1677_v43 = vadd.f32 %v1669_v4, %v1575_v41  ;;  %v1956_v4 = vld [vmem:[#allocation3] ss:$0 sm:$0xff] }
 0x71c   :  { %v1619_v26 = vpop.f32.mrf.mxu0  ;;  %v1660_v36 = vpop.f32.mrf.mxu1 }
 0x71d   :  { %2155 = vpow2.f32 %v1949_v16  ;;  %v1950_v39 = vmul.f32 -1.442695, %v1675_v13 }
 0x71f   :  { %2157 = vpow2.f32 %v1950_v39  ;;  %v1955_v39 = vld [vmem:[%s2838_s4] ss:$0 sm:$0xff] }
 0x720   :  { %2159 = vpow2.f32 %v1951_v37 }
 0x72a   :  { %v2156_v42 = vpop.eup %2155 }
 0x72b   :  { %v1687_v44 = vadd.f32 1.0, %v2156_v42 }
 0x72c   :  { %v2158_v45 = vpop.eup %2157 }
 0x72d   :  { %2161 = vrcp.f32 %v1687_v44  ;;  %v1688_v46 = vadd.f32 1.0, %v2158_v45  ;;  %v2160_v47 = vpop.eup %2159 }
 0x72e   :  { %2163 = vtanh.f32 %v1677_v43  ;;  %v1689_v2 = vadd.f32 1.0, %v2160_v47 }
 0x72f   :  { %2165 = vrcp.f32 %v1688_v46 }
 0x730   :  { %2167 = vrcp.f32 %v1689_v2 }
 0x73a   :  { %v2162_v48 = vpop.eup %2161 }
 0x73b   :  { %v2164_v49 = vpop.eup %2163 }
 0x73c   :  { %v2166_v52 = vpop.eup %2165  ;;  %v1701_v17 = vmul.f32 %v2164_v49, %v2162_v48 }
 0x73d   :  { %v1700_v3 = vmul.f32 %v2166_v52, %v1698_v50  ;;  %v2168_v9 = vpop.eup %2167 }
 0x73f   :  { %v1702_v8 = vadd.f32 %v1701_v17, %v1700_v3 }
 0x741   :  { %2169 = vtanh.f32 %v1702_v8  ;;  %v1831_v27 = vrot.slane %v1702_v8, 6 }
 0x74e   :  { %v2170_v10 = vpop.eup %2169 }
 0x74f   :  { %v1704_v11 = vmul.f32 %v2170_v10, %v2168_v9 }
 0x751   :  { %v1709_v38 = vpack.c.bf16 %v1704_v11, %v1704_v11 }
 0x753   :  { %v1711_v40 = vrot.slane %v1709_v38, 2 }
 0x755   :  { %1746 = vmatmul.mubr.bf16.vlgmr.msra.gmra.mxu0 %v1711_v40  ;;  %1787 = vmatmul.mubr.bf16.vlgmr.msra.gmra.mxu1 %v1711_v40 }
 0x815   :  { %v1747_v19 = vpop.f32.mrf.mxu0  ;;  %v1788_v20 = vpop.f32.mrf.mxu1 }
 0x816   :  { %v1799_v22 = vrot.slane %v1747_v19, 2  ;;  %v1801_v58 = vrot.slane %v1788_v20, 2 }
 0x817   :  { %v1749_v25 = vpop.f32.mrf.mxu0  ;;  %v1790_v23 = vpop.f32.mrf.mxu1 }
 0x818   :  { %v1807_v12 = vadd.f32 %v1799_v22, %v1705_v33  ;;  %v1800_v32 = vrot.slane %v1749_v25, 2  ;;  %v1809_v60 = vadd.f32 %v1801_v58, %v1707_v59  ;;  %v1802_v61 = vrot.slane %v1790_v23, 2 }
 0x819   :  { %v1751_v51 = vpop.f32.mrf.mxu0  ;;  %v1792_v53 = vpop.f32.mrf.mxu1 }
 0x81a   :  { %v1952_v54 = vmul.f32 -1.442695, %v1807_v12  ;;  %v1808_v55 = vadd.f32 %v1800_v32, %v1706_v24  ;;  %v1954_v62 = vmul.f32 -1.442695, %v1809_v60  ;;  %v1810_v6 = vadd.f32 %v1802_v61, %v1708_v63 }
 0x81b   :  { %v1752_v56 = vpop.f32.mrf.mxu0  ;;  %v1793_v14 = vpop.f32.mrf.mxu1 }
 0x81c   :  { %2171 = vpow2.f32 %v1952_v54  ;;  %v1953_v57 = vmul.f32 -1.442695, %v1808_v55 }
 0x81e   :  { %2173 = vpow2.f32 %v1953_v57 }
 0x81f   :  { %2175 = vpow2.f32 %v1954_v62 }
 0x829   :  { %v2172_v0 = vpop.eup %2171 }
 0x82a   :  { %v1820_v21 = vadd.f32 1.0, %v2172_v0 }
 0x82b   :  { %v2174_v30 = vpop.eup %2173 }
 0x82c   :  { %2177 = vrcp.f32 %v1820_v21  ;;  %v1821_v5 = vadd.f32 1.0, %v2174_v30  ;;  %v2176_v34 = vpop.eup %2175 }
 0x82d   :  { %2179 = vtanh.f32 %v1810_v6  ;;  %v1822_v31 = vadd.f32 1.0, %v2176_v34 }
 0x82e   :  { %2181 = vrcp.f32 %v1821_v5 }
 0x82f   :  { %2183 = vrcp.f32 %v1822_v31 }
 0x839   :  { %v2178_v15 = vpop.eup %2177 }
 0x83a   :  { %v2180_v1 = vpop.eup %2179 }
 0x83b   :  { %v2182_v18 = vpop.eup %2181  ;;  %v1834_v29 = vmul.f32 %v2180_v1, %v2178_v15 }
 0x83c   :  { %v1833_v16 = vmul.f32 %v2182_v18, %v1831_v27  ;;  %v2184_v26 = vpop.eup %2183 }
 0x83e   :  { %v1835_v13 = vadd.f32 %v1834_v29, %v1833_v16 }
 0x840   :  { %2185 = vtanh.f32 %v1835_v13 }
 0x84d   :  { %v2186_v36 = vpop.eup %2185 }
 0x84e   :  { %v1837_v28 = vmul.f32 %v2186_v36, %v2184_v26 }
 0x850   :  { %v1845_v35 = vmul.f32 %v1955_v39, %v1837_v28 }
 0x852   :  { %v1847_v7 = vsel %vm1846_vm4, %v1845_v35, 0.0 }
 0x853   :  { %1848 = vadd.xlane.f32.xlu0 %v1847_v7 }
 0x8dc   :  { %v1849_v37 = vpop.xlane.xlu0 %1848 }
 0x8dd   :  { %v1857_v41 = vadd.f32 %v1956_v4, %v1849_v37 }
 0x8df   :  { %1859 = vst.msk [vmem:[%s2840_s6 - $0x6] sm:$0xc0] %vm1858_vm5, %v1857_v41 }
 0x8e0   :  { %1864 = vsyncpa [#allocation5], 1 }
 0x8e1   :  { %1865 = vsyncpa [#allocation7], 1 }

</bundles_post_ra>
